<compile_context>
chip_gen: v7x
topology: tpu7x:2x2x1
jax: 0.10.0
libtpu: 0.0.40
codegen_flags: <defaults>
</compile_context>

<pallas_src>
import functools
import math

import jax
import jax.numpy as jnp
from jax.experimental import pallas as pl
from jax.experimental.pallas import tpu as pltpu

EMBED_DIM = 32
NUM_HEADS = 4
HIDDEN_DIM = 64
HEAD_DIM = EMBED_DIM // NUM_HEADS
LN_EPS = 1e-5


def _layer_norm(x, gamma, beta):
    # single-pass: var = E[x^2] - mu^2
    mu = jnp.mean(x, axis=-1, keepdims=True)
    var = jnp.mean(x * x, axis=-1, keepdims=True) - mu * mu
    return (x - mu) * jax.lax.rsqrt(var + LN_EPS) * gamma + beta


def _gelu(x):
    # tanh-approx GELU: ~4 VALU ops/elem + one EUP tanh (vs ~10-op rational erf).
    c = 0.7978845608028654  # sqrt(2/pi)
    return 0.5 * x * (1.0 + jnp.tanh(c * (x + 0.044715 * x * x * x)))


def _decoder_layer_kernel(x_ref, vec_ref, wqkv_ref, wo_ref, w1_ref, w2_ref,
                          out_ref, oheads_ref, *, batch_tile, seq_len, lane_dense):
    E, H, D, HID = EMBED_DIM, NUM_HEADS, HEAD_DIM, HIDDEN_DIM
    Bt, S = batch_tile, seq_len
    N = Bt * S

    x = x_ref[...]                      # (N, E) — Bt batch elements, flattened rows
    vec = vec_ref[...]                  # (8, 128) packed LayerNorm / bias vectors
    ln1_g, ln1_b = vec[0:1, :E], vec[1:2, :E]
    ln2_g, ln2_b = vec[2:3, :E], vec[3:4, :E]
    bqkv = vec[4:5, :3 * E]             # q-bias already pre-scaled by 1/sqrt(D)
    bo = vec[5:6, :E]
    b1 = vec[6:7, :HID]
    b2 = vec[7:8, :E]

    # ---- self-attention block (pre-norm); key = value = query ----
    xn = _layer_norm(x, ln1_g, ln1_b)
    qkv = jnp.dot(xn, wqkv_ref[...], preferred_element_type=jnp.float32) + bqkv
    q, k, v = qkv[:, :E], qkv[:, E:2 * E], qkv[:, 2 * E:]

    # Per-head attention (static unroll over H=4); each head's context is written to
    # its static lane slice of a (N, E) VMEM scratch so the output projection is a
    # single (N, 32) @ (32, 32) dot instead of 4 (N, 8) @ (8, 32) dots.
    for h in range(H):
        sl = slice(h * D, (h + 1) * D)
        qh = q[:, sl].reshape(Bt, S, D)   # leading-dim-only reshapes (row split)
        kh = k[:, sl].reshape(Bt, S, D)
        vh = v[:, sl].reshape(Bt, S, D)
        s = jnp.einsum('bqd,bkd->bqk', qh, kh,
                       preferred_element_type=jnp.float32)   # scale folded into wq/bq
        s = s - jnp.max(s, axis=-1, keepdims=True)
        p = jnp.exp(s)
        p = p * pl.reciprocal(jnp.sum(p, axis=-1, keepdims=True), approx=True)
        oh = jnp.einsum('bqk,bkd->bqd', p, vh, preferred_element_type=jnp.float32)
        oheads_ref[:, sl] = oh.reshape(N, D)

    attn = jnp.dot(oheads_ref[...], wo_ref[...],
                   preferred_element_type=jnp.float32) + bo
    x = x + attn  # residual (dropout = identity in eval)

    # ---- feedforward block (pre-norm) ----
    xn2 = _layer_norm(x, ln2_g, ln2_b)
    h1 = jnp.dot(xn2, w1_ref[...], preferred_element_type=jnp.float32) + b1
    h1 = _gelu(h1)
    ff = jnp.dot(h1, w2_ref[...], preferred_element_type=jnp.float32) + b2

    y = x + ff
    if lane_dense:
        # lane-dense store: 4 consecutive E=32 rows packed into one 128-lane row
        out_ref[...] = y.reshape(N // 4, 128)
    else:
        out_ref[...] = y


def _vmem_budget():
    """Per-generation scoped-VMEM limit and row budget (half of physical VMEM)."""
    try:
        phys = int(pltpu.get_tpu_info().vmem_capacity_bytes)
    except Exception:
        phys = 64 * 1024 * 1024   # conservative fallback (v7x per-core size)
    vmem_limit = int(min(phys // 2, 96 * 1024 * 1024))
    # ~8 KiB of lane-padded f32 activations / intermediates / double-buffers per row
    max_rows = int(max(256, min(8192, vmem_limit // (8 * 1024))))
    return vmem_limit, max_rows


def _choose_batch_tile(B, S, max_rows):
    """Largest batch tile (dividing B) fitting the row budget, with >=2 grid steps
    when B allows it (v7x megacore), respecting TPU block layout constraints."""
    bt = max(1, min(B, max(1, max_rows // max(S, 1))))
    if bt >= B and B >= 2:
        bt = (B + 1) // 2            # keep >= 2 grid steps so both TCs get work
    while bt > 1 and (B % bt != 0):
        bt -= 1
    # Unless the block covers the full array:
    #   input block (bt*S, E)        needs bt*S % 8 == 0
    #   dense out   (bt*S//4, 128)   needs bt*S % 32 == 0
    if bt != B and (bt * S) % 32 != 0:
        bt = B
    return bt


def _pad_row(v, width=128):
    v = jnp.asarray(v, jnp.float32).reshape(-1)
    return jnp.pad(v, (0, width - v.shape[0]))


def transformer_decoder_layer(tgt, params):
    B, S, E = tgt.shape
    assert E == EMBED_DIM
    HID = HIDDEN_DIM
    scale = 1.0 / math.sqrt(HEAD_DIM)

    # Fused QKV weight with the attention scale folded into the Q part.
    wqkv = jnp.concatenate(
        [params["wq"] * scale, params["wk"], params["wv"]], axis=1)  # (E, 3E)

    # Pack all LayerNorm / bias vectors into one (8, 128) slab (single small DMA).
    vec = jnp.stack([
        _pad_row(params["ln1_g"]), _pad_row(params["ln1_b"]),
        _pad_row(params["ln2_g"]), _pad_row(params["ln2_b"]),
        _pad_row(jnp.concatenate([params["bq"].reshape(-1) * scale,
                                  params["bk"].reshape(-1),
                                  params["bv"].reshape(-1)])),
        _pad_row(params["bo"]), _pad_row(params["b1"]), _pad_row(params["b2"]),
    ])  # (8, 128)

    vmem_limit, max_rows = _vmem_budget()
    Bt = _choose_batch_tile(B, S, max_rows)
    Rt = Bt * S
    x2 = tgt.reshape(B * S, E).astype(jnp.float32)

    can_lane_dense = (Rt % 32 == 0) or (Bt == B and (B * S) % 4 == 0)

    def _call(lane_dense):
        kernel = functools.partial(_decoder_layer_kernel,
                                   batch_tile=Bt, seq_len=S, lane_dense=lane_dense)
        if lane_dense:
            out_shape = jax.ShapeDtypeStruct((B * S // 4, 128), jnp.float32)
            out_spec = pl.BlockSpec((Rt // 4, 128), lambda i: (i, 0))
        else:
            out_shape = jax.ShapeDtypeStruct((B * S, E), jnp.float32)
            out_spec = pl.BlockSpec((Rt, E), lambda i: (i, 0))
        return pl.pallas_call(
            kernel,
            out_shape=out_shape,
            grid_spec=pltpu.PrefetchScalarGridSpec(
                num_scalar_prefetch=0,
                grid=(B // Bt,),
                in_specs=[
                    pl.BlockSpec((Rt, E), lambda i: (i, 0)),        # tgt rows
                    pl.BlockSpec((8, 128), lambda i: (0, 0)),        # packed vectors
                    pl.BlockSpec((E, 3 * E), lambda i: (0, 0)),      # fused wqkv
                    pl.BlockSpec((E, E), lambda i: (0, 0)),          # wo
                    pl.BlockSpec((E, HID), lambda i: (0, 0)),        # w1
                    pl.BlockSpec((HID, E), lambda i: (0, 0)),        # w2
                ],
                out_specs=out_spec,
                scratch_shapes=[pltpu.VMEM((Rt, E), jnp.float32)],   # per-head contexts
            ),
            compiler_params=pltpu.CompilerParams(
                dimension_semantics=("parallel",),   # batch-tile axis shards across TCs
                vmem_limit_bytes=vmem_limit,
            ),
        )(x2, vec, wqkv, params["wo"], params["w1"], params["w2"])

    out = None
    if can_lane_dense:
        try:
            out = _call(True)
            jax.block_until_ready(out)
        except Exception:
            out = None   # fall back to the masked-store layout below
    if out is None:
        out = _call(False)

    return out.reshape(B, S, E)


def init_params(key, embed_dim=EMBED_DIM, hidden_dim=HIDDEN_DIM):
    ks = jax.random.split(key, 6)

    def lin_w(k, fan_in, fan_out):
        return jax.random.normal(k, (fan_in, fan_out), jnp.float32) * 0.02

    return {
        "ln1_g": jnp.ones((1, embed_dim), jnp.float32),
        "ln1_b": jnp.zeros((1, embed_dim), jnp.float32),
        "wq": lin_w(ks[0], embed_dim, embed_dim),
        "bq": jnp.zeros((1, embed_dim), jnp.float32),
        "wk": lin_w(ks[1], embed_dim, embed_dim),
        "bk": jnp.zeros((1, embed_dim), jnp.float32),
        "wv": lin_w(ks[2], embed_dim, embed_dim),
        "bv": jnp.zeros((1, embed_dim), jnp.float32),
        "wo": lin_w(ks[3], embed_dim, embed_dim),
        "bo": jnp.zeros((1, embed_dim), jnp.float32),
        "ln2_g": jnp.ones((1, embed_dim), jnp.float32),
        "ln2_b": jnp.zeros((1, embed_dim), jnp.float32),
        "w1": lin_w(ks[4], embed_dim, hidden_dim),
        "b1": jnp.zeros((1, hidden_dim), jnp.float32),
        "w2": lin_w(ks[5], hidden_dim, embed_dim),
        "b2": jnp.zeros((1, embed_dim), jnp.float32),
    }


def _reference_forward(tgt, params):
    """Pure-JAX reference (exact softmax divide / exact erf GELU) for a sanity check."""
    B, S, E = tgt.shape
    H, D = NUM_HEADS, HEAD_DIM

    def ln(x, g, b):
        mu = x.mean(-1, keepdims=True)
        var = ((x - mu) ** 2).mean(-1, keepdims=True)
        return (x - mu) / jnp.sqrt(var + LN_EPS) * g.reshape(-1) + b.reshape(-1)

    xn = ln(tgt, params["ln1_g"], params["ln1_b"])
    q = (xn @ params["wq"] + params["bq"].reshape(-1)).reshape(B, S, H, D).transpose(0, 2, 1, 3)
    k = (xn @ params["wk"] + params["bk"].reshape(-1)).reshape(B, S, H, D).transpose(0, 2, 1, 3)
    v = (xn @ params["wv"] + params["bv"].reshape(-1)).reshape(B, S, H, D).transpose(0, 2, 1, 3)
    s = (q @ k.transpose(0, 1, 3, 2)) / math.sqrt(D)
    p = jax.nn.softmax(s, axis=-1)
    o = (p @ v).transpose(0, 2, 1, 3).reshape(B, S, E)
    attn = o @ params["wo"] + params["bo"].reshape(-1)
    x = tgt + attn
    xn2 = ln(x, params["ln2_g"], params["ln2_b"])
    h1 = xn2 @ params["w1"] + params["b1"].reshape(-1)
    h1 = 0.5 * h1 * (1.0 + jax.scipy.special.erf(h1 / math.sqrt(2.0)))
    ff = h1 @ params["w2"] + params["b2"].reshape(-1)
    return x + ff


if __name__ == "__main__":
    key = jax.random.PRNGKey(0)
    kx, kp = jax.random.split(key)

    B, S, E = 2, 8, EMBED_DIM
    tgt = jax.random.normal(kx, (B, S, E), jnp.float32)
    params = init_params(kp)

    out = transformer_decoder_layer(tgt, params)
    jax.block_until_ready(out)

    assert out.shape == (B, S, E) and out.dtype == jnp.float32
    ref = _reference_forward(tgt, params)
    assert jnp.allclose(out, ref, atol=5e-2, rtol=5e-2), float(jnp.max(jnp.abs(out - ref)))
    print("KERNEL_OK")
</pallas_src>

<mosaic_0001>
module attributes {stable_mosaic.version = 11 : i64} {
  func.func @_decoder_layer_kernel(%arg0: i32, %arg1: memref<16x32xf32, #tpu.memory_space<vmem>>, %arg2: memref<8x128xf32, #tpu.memory_space<vmem>>, %arg3: memref<32x96xf32, #tpu.memory_space<vmem>>, %arg4: memref<32x32xf32, #tpu.memory_space<vmem>>, %arg5: memref<32x64xf32, #tpu.memory_space<vmem>>, %arg6: memref<64x32xf32, #tpu.memory_space<vmem>>, %arg7: memref<4x128xf32, #tpu.memory_space<vmem>>, %arg8: memref<16x32xf32, #tpu.memory_space<vmem>>) attributes {dimension_semantics = [#tpu.dimension_semantics<parallel>], iteration_bounds = array<i64: 1>, scalar_prefetch = 0 : i64, scratch_operands = 1 : i64, tpu.core_type = #tpu.core_type<tc>, window_params = [{transform_indices = @transform_0, window_bounds = array<i64: 16, 32>}, {pipeline_mode = #tpu.pipeline_mode<synchronous>, transform_indices = @transform_1, window_bounds = array<i64: 8, 128>}, {pipeline_mode = #tpu.pipeline_mode<synchronous>, transform_indices = @transform_2, window_bounds = array<i64: 32, 96>}, {pipeline_mode = #tpu.pipeline_mode<synchronous>, transform_indices = @transform_3, window_bounds = array<i64: 32, 32>}, {pipeline_mode = #tpu.pipeline_mode<synchronous>, transform_indices = @transform_4, window_bounds = array<i64: 32, 64>}, {pipeline_mode = #tpu.pipeline_mode<synchronous>, transform_indices = @transform_5, window_bounds = array<i64: 64, 32>}, {transform_indices = @transform_6, window_bounds = array<i64: 4, 128>}]} {
    %c0 = arith.constant 0 : index
    %c0_0 = arith.constant 0 : index
    %0 = vector.load %arg1[%c0, %c0_0] : memref<16x32xf32, #tpu.memory_space<vmem>>, vector<16x32xf32>
    %c0_1 = arith.constant 0 : index
    %c0_2 = arith.constant 0 : index
    %1 = vector.load %arg2[%c0_1, %c0_2] : memref<8x128xf32, #tpu.memory_space<vmem>>, vector<8x128xf32>
    %2 = vector.extract_strided_slice %1 {offsets = [0, 0], sizes = [1, 32], strides = [1, 1]} : vector<8x128xf32> to vector<1x32xf32>
    %3 = vector.extract_strided_slice %1 {offsets = [1, 0], sizes = [1, 32], strides = [1, 1]} : vector<8x128xf32> to vector<1x32xf32>
    %4 = vector.extract_strided_slice %1 {offsets = [2, 0], sizes = [1, 32], strides = [1, 1]} : vector<8x128xf32> to vector<1x32xf32>
    %5 = vector.extract_strided_slice %1 {offsets = [3, 0], sizes = [1, 32], strides = [1, 1]} : vector<8x128xf32> to vector<1x32xf32>
    %6 = vector.extract_strided_slice %1 {offsets = [4, 0], sizes = [1, 96], strides = [1, 1]} : vector<8x128xf32> to vector<1x96xf32>
    %7 = vector.extract_strided_slice %1 {offsets = [5, 0], sizes = [1, 32], strides = [1, 1]} : vector<8x128xf32> to vector<1x32xf32>
    %8 = vector.extract_strided_slice %1 {offsets = [6, 0], sizes = [1, 64], strides = [1, 1]} : vector<8x128xf32> to vector<1x64xf32>
    %9 = vector.extract_strided_slice %1 {offsets = [7, 0], sizes = [1, 32], strides = [1, 1]} : vector<8x128xf32> to vector<1x32xf32>
    %cst = arith.constant dense<0.000000e+00> : vector<16xf32>
    %10 = vector.multi_reduction <add>, %0, %cst [1] : vector<16x32xf32> to vector<16xf32>
    %11 = vector.shape_cast %10 : vector<16xf32> to vector<16x1xf32>
    %cst_3 = arith.constant 3.200000e+01 : f32
    %12 = vector.broadcast %cst_3 : f32 to vector<16x1xf32>
    %13 = arith.divf %11, %12 : vector<16x1xf32>
    %14 = arith.mulf %0, %0 : vector<16x32xf32>
    %cst_4 = arith.constant dense<0.000000e+00> : vector<16xf32>
    %15 = vector.multi_reduction <add>, %14, %cst_4 [1] : vector<16x32xf32> to vector<16xf32>
    %16 = vector.shape_cast %15 : vector<16xf32> to vector<16x1xf32>
    %cst_5 = arith.constant 3.200000e+01 : f32
    %17 = vector.broadcast %cst_5 : f32 to vector<16x1xf32>
    %18 = arith.divf %16, %17 : vector<16x1xf32>
    %19 = arith.mulf %13, %13 : vector<16x1xf32>
    %20 = arith.subf %18, %19 : vector<16x1xf32>
    %21 = vector.broadcast %13 : vector<16x1xf32> to vector<16x32xf32>
    %22 = arith.subf %0, %21 : vector<16x32xf32>
    %cst_6 = arith.constant 9.99999974E-6 : f32
    %23 = vector.broadcast %cst_6 : f32 to vector<16x1xf32>
    %24 = arith.addf %20, %23 : vector<16x1xf32>
    %25 = math.rsqrt %24 : vector<16x1xf32>
    %26 = vector.broadcast %25 : vector<16x1xf32> to vector<16x32xf32>
    %27 = arith.mulf %22, %26 : vector<16x32xf32>
    %28 = vector.broadcast %2 : vector<1x32xf32> to vector<16x32xf32>
    %29 = arith.mulf %27, %28 : vector<16x32xf32>
    %30 = vector.broadcast %3 : vector<1x32xf32> to vector<16x32xf32>
    %31 = arith.addf %29, %30 : vector<16x32xf32>
    %c0_7 = arith.constant 0 : index
    %c0_8 = arith.constant 0 : index
    %32 = vector.load %arg3[%c0_7, %c0_8] : memref<32x96xf32, #tpu.memory_space<vmem>>, vector<32x96xf32>
    %cst_9 = arith.constant dense<0.000000e+00> : vector<16x96xf32>
    %33 = tpu.matmul %31, %32, %cst_9 {dimension_numbers = #tpu.dot_dimension_numbers<[1], [0], [0], [1], [0, 0, 1, 1], [], []>} : vector<16x32xf32>, vector<32x96xf32>, vector<16x96xf32> -> vector<16x96xf32>
    %34 = vector.broadcast %6 : vector<1x96xf32> to vector<16x96xf32>
    %35 = arith.addf %33, %34 : vector<16x96xf32>
    %36 = vector.extract_strided_slice %35 {offsets = [0, 0], sizes = [16, 32], strides = [1, 1]} : vector<16x96xf32> to vector<16x32xf32>
    %37 = vector.extract_strided_slice %35 {offsets = [0, 32], sizes = [16, 32], strides = [1, 1]} : vector<16x96xf32> to vector<16x32xf32>
    %38 = vector.extract_strided_slice %35 {offsets = [0, 64], sizes = [16, 32], strides = [1, 1]} : vector<16x96xf32> to vector<16x32xf32>
    %39 = vector.extract_strided_slice %36 {offsets = [0, 0], sizes = [16, 8], strides = [1, 1]} : vector<16x32xf32> to vector<16x8xf32>
    %40 = vector.shape_cast %39 : vector<16x8xf32> to vector<2x8x8xf32>
    %41 = vector.extract_strided_slice %37 {offsets = [0, 0], sizes = [16, 8], strides = [1, 1]} : vector<16x32xf32> to vector<16x8xf32>
    %42 = vector.shape_cast %41 : vector<16x8xf32> to vector<2x8x8xf32>
    %43 = vector.extract_strided_slice %38 {offsets = [0, 0], sizes = [16, 8], strides = [1, 1]} : vector<16x32xf32> to vector<16x8xf32>
    %44 = vector.shape_cast %43 : vector<16x8xf32> to vector<2x8x8xf32>
    "tpu.trace_start"() <{level = 10 : i32, message = "bqd,bkd->bqk"}> : () -> ()
    %cst_10 = arith.constant dense<0.000000e+00> : vector<2x8x8xf32>
    %45 = tpu.matmul %40, %42, %cst_10 {dimension_numbers = #tpu.dot_dimension_numbers<[2], [2], [1], [1], [0, 0, 0, 1, 1, 1], [0], [0]>} : vector<2x8x8xf32>, vector<2x8x8xf32>, vector<2x8x8xf32> -> vector<2x8x8xf32>
    "tpu.trace_stop"() : () -> ()
    %cst_11 = arith.constant dense<0xFF800000> : vector<2x8xf32>
    %46 = vector.multi_reduction <maximumf>, %45, %cst_11 [2] : vector<2x8x8xf32> to vector<2x8xf32>
    %47 = vector.shape_cast %46 : vector<2x8xf32> to vector<2x8x1xf32>
    %48 = vector.broadcast %47 : vector<2x8x1xf32> to vector<2x8x8xf32>
    %49 = arith.subf %45, %48 : vector<2x8x8xf32>
    %50 = math.exp %49 : vector<2x8x8xf32>
    %cst_12 = arith.constant dense<0.000000e+00> : vector<2x8xf32>
    %51 = vector.multi_reduction <add>, %50, %cst_12 [2] : vector<2x8x8xf32> to vector<2x8xf32>
    %52 = vector.shape_cast %51 : vector<2x8xf32> to vector<2x8x1xf32>
    %53 = tpu.reciprocal %52 {approx = true} : vector<2x8x1xf32> -> vector<2x8x1xf32>
    %54 = vector.broadcast %53 : vector<2x8x1xf32> to vector<2x8x8xf32>
    %55 = arith.mulf %50, %54 : vector<2x8x8xf32>
    "tpu.trace_start"() <{level = 10 : i32, message = "bqk,bkd->bqd"}> : () -> ()
    %cst_13 = arith.constant dense<0.000000e+00> : vector<2x8x8xf32>
    %56 = tpu.matmul %55, %44, %cst_13 {dimension_numbers = #tpu.dot_dimension_numbers<[2], [1], [1], [2], [0, 0, 0, 1, 1, 2], [0], [0]>} : vector<2x8x8xf32>, vector<2x8x8xf32>, vector<2x8x8xf32> -> vector<2x8x8xf32>
    "tpu.trace_stop"() : () -> ()
    %57 = vector.shape_cast %56 : vector<2x8x8xf32> to vector<16x8xf32>
    %c0_14 = arith.constant 0 : index
    %c0_15 = arith.constant 0 : index
    %58 = vector.load %arg8[%c0_14, %c0_15] : memref<16x32xf32, #tpu.memory_space<vmem>>, vector<16x8xf32>
    tpu.vector_store %arg8[%c0_14, %c0_15], %57 {strides = array<i32>} : memref<16x32xf32, #tpu.memory_space<vmem>>, vector<16x8xf32>,
    %59 = vector.extract_strided_slice %36 {offsets = [0, 8], sizes = [16, 8], strides = [1, 1]} : vector<16x32xf32> to vector<16x8xf32>
    %60 = vector.shape_cast %59 : vector<16x8xf32> to vector<2x8x8xf32>
    %61 = vector.extract_strided_slice %37 {offsets = [0, 8], sizes = [16, 8], strides = [1, 1]} : vector<16x32xf32> to vector<16x8xf32>
    %62 = vector.shape_cast %61 : vector<16x8xf32> to vector<2x8x8xf32>
    %63 = vector.extract_strided_slice %38 {offsets = [0, 8], sizes = [16, 8], strides = [1, 1]} : vector<16x32xf32> to vector<16x8xf32>
    %64 = vector.shape_cast %63 : vector<16x8xf32> to vector<2x8x8xf32>
    "tpu.trace_start"() <{level = 10 : i32, message = "bqd,bkd->bqk"}> : () -> ()
    %cst_16 = arith.constant dense<0.000000e+00> : vector<2x8x8xf32>
    %65 = tpu.matmul %60, %62, %cst_16 {dimension_numbers = #tpu.dot_dimension_numbers<[2], [2], [1], [1], [0, 0, 0, 1, 1, 1], [0], [0]>} : vector<2x8x8xf32>, vector<2x8x8xf32>, vector<2x8x8xf32> -> vector<2x8x8xf32>
    "tpu.trace_stop"() : () -> ()
    %cst_17 = arith.constant dense<0xFF800000> : vector<2x8xf32>
    %66 = vector.multi_reduction <maximumf>, %65, %cst_17 [2] : vector<2x8x8xf32> to vector<2x8xf32>
    %67 = vector.shape_cast %66 : vector<2x8xf32> to vector<2x8x1xf32>
    %68 = vector.broadcast %67 : vector<2x8x1xf32> to vector<2x8x8xf32>
    %69 = arith.subf %65, %68 : vector<2x8x8xf32>
    %70 = math.exp %69 : vector<2x8x8xf32>
    %cst_18 = arith.constant dense<0.000000e+00> : vector<2x8xf32>
    %71 = vector.multi_reduction <add>, %70, %cst_18 [2] : vector<2x8x8xf32> to vector<2x8xf32>
    %72 = vector.shape_cast %71 : vector<2x8xf32> to vector<2x8x1xf32>
    %73 = tpu.reciprocal %72 {approx = true} : vector<2x8x1xf32> -> vector<2x8x1xf32>
    %74 = vector.broadcast %73 : vector<2x8x1xf32> to vector<2x8x8xf32>
    %75 = arith.mulf %70, %74 : vector<2x8x8xf32>
    "tpu.trace_start"() <{level = 10 : i32, message = "bqk,bkd->bqd"}> : () -> ()
    %cst_19 = arith.constant dense<0.000000e+00> : vector<2x8x8xf32>
    %76 = tpu.matmul %75, %64, %cst_19 {dimension_numbers = #tpu.dot_dimension_numbers<[2], [1], [1], [2], [0, 0, 0, 1, 1, 2], [0], [0]>} : vector<2x8x8xf32>, vector<2x8x8xf32>, vector<2x8x8xf32> -> vector<2x8x8xf32>
    "tpu.trace_stop"() : () -> ()
    %77 = vector.shape_cast %76 : vector<2x8x8xf32> to vector<16x8xf32>
    %c0_20 = arith.constant 0 : index
    %c8 = arith.constant 8 : index
    %78 = vector.load %arg8[%c0_20, %c8] : memref<16x32xf32, #tpu.memory_space<vmem>>, vector<16x8xf32>
    tpu.vector_store %arg8[%c0_20, %c8], %77 {strides = array<i32>} : memref<16x32xf32, #tpu.memory_space<vmem>>, vector<16x8xf32>,
    %79 = vector.extract_strided_slice %36 {offsets = [0, 16], sizes = [16, 8], strides = [1, 1]} : vector<16x32xf32> to vector<16x8xf32>
    %80 = vector.shape_cast %79 : vector<16x8xf32> to vector<2x8x8xf32>
    %81 = vector.extract_strided_slice %37 {offsets = [0, 16], sizes = [16, 8], strides = [1, 1]} : vector<16x32xf32> to vector<16x8xf32>
    %82 = vector.shape_cast %81 : vector<16x8xf32> to vector<2x8x8xf32>
    %83 = vector.extract_strided_slice %38 {offsets = [0, 16], sizes = [16, 8], strides = [1, 1]} : vector<16x32xf32> to vector<16x8xf32>
    %84 = vector.shape_cast %83 : vector<16x8xf32> to vector<2x8x8xf32>
    "tpu.trace_start"() <{level = 10 : i32, message = "bqd,bkd->bqk"}> : () -> ()
    %cst_21 = arith.constant dense<0.000000e+00> : vector<2x8x8xf32>
    %85 = tpu.matmul %80, %82, %cst_21 {dimension_numbers = #tpu.dot_dimension_numbers<[2], [2], [1], [1], [0, 0, 0, 1, 1, 1], [0], [0]>} : vector<2x8x8xf32>, vector<2x8x8xf32>, vector<2x8x8xf32> -> vector<2x8x8xf32>
    "tpu.trace_stop"() : () -> ()
    %cst_22 = arith.constant dense<0xFF800000> : vector<2x8xf32>
    %86 = vector.multi_reduction <maximumf>, %85, %cst_22 [2] : vector<2x8x8xf32> to vector<2x8xf32>
    %87 = vector.shape_cast %86 : vector<2x8xf32> to vector<2x8x1xf32>
    %88 = vector.broadcast %87 : vector<2x8x1xf32> to vector<2x8x8xf32>
    %89 = arith.subf %85, %88 : vector<2x8x8xf32>
    %90 = math.exp %89 : vector<2x8x8xf32>
    %cst_23 = arith.constant dense<0.000000e+00> : vector<2x8xf32>
    %91 = vector.multi_reduction <add>, %90, %cst_23 [2] : vector<2x8x8xf32> to vector<2x8xf32>
    %92 = vector.shape_cast %91 : vector<2x8xf32> to vector<2x8x1xf32>
    %93 = tpu.reciprocal %92 {approx = true} : vector<2x8x1xf32> -> vector<2x8x1xf32>
    %94 = vector.broadcast %93 : vector<2x8x1xf32> to vector<2x8x8xf32>
    %95 = arith.mulf %90, %94 : vector<2x8x8xf32>
    "tpu.trace_start"() <{level = 10 : i32, message = "bqk,bkd->bqd"}> : () -> ()
    %cst_24 = arith.constant dense<0.000000e+00> : vector<2x8x8xf32>
    %96 = tpu.matmul %95, %84, %cst_24 {dimension_numbers = #tpu.dot_dimension_numbers<[2], [1], [1], [2], [0, 0, 0, 1, 1, 2], [0], [0]>} : vector<2x8x8xf32>, vector<2x8x8xf32>, vector<2x8x8xf32> -> vector<2x8x8xf32>
    "tpu.trace_stop"() : () -> ()
    %97 = vector.shape_cast %96 : vector<2x8x8xf32> to vector<16x8xf32>
    %c0_25 = arith.constant 0 : index
    %c16 = arith.constant 16 : index
    %98 = vector.load %arg8[%c0_25, %c16] : memref<16x32xf32, #tpu.memory_space<vmem>>, vector<16x8xf32>
    tpu.vector_store %arg8[%c0_25, %c16], %97 {strides = array<i32>} : memref<16x32xf32, #tpu.memory_space<vmem>>, vector<16x8xf32>,
    %99 = vector.extract_strided_slice %36 {offsets = [0, 24], sizes = [16, 8], strides = [1, 1]} : vector<16x32xf32> to vector<16x8xf32>
    %100 = vector.shape_cast %99 : vector<16x8xf32> to vector<2x8x8xf32>
    %101 = vector.extract_strided_slice %37 {offsets = [0, 24], sizes = [16, 8], strides = [1, 1]} : vector<16x32xf32> to vector<16x8xf32>
    %102 = vector.shape_cast %101 : vector<16x8xf32> to vector<2x8x8xf32>
    %103 = vector.extract_strided_slice %38 {offsets = [0, 24], sizes = [16, 8], strides = [1, 1]} : vector<16x32xf32> to vector<16x8xf32>
    %104 = vector.shape_cast %103 : vector<16x8xf32> to vector<2x8x8xf32>
    "tpu.trace_start"() <{level = 10 : i32, message = "bqd,bkd->bqk"}> : () -> ()
    %cst_26 = arith.constant dense<0.000000e+00> : vector<2x8x8xf32>
    %105 = tpu.matmul %100, %102, %cst_26 {dimension_numbers = #tpu.dot_dimension_numbers<[2], [2], [1], [1], [0, 0, 0, 1, 1, 1], [0], [0]>} : vector<2x8x8xf32>, vector<2x8x8xf32>, vector<2x8x8xf32> -> vector<2x8x8xf32>
    "tpu.trace_stop"() : () -> ()
    %cst_27 = arith.constant dense<0xFF800000> : vector<2x8xf32>
    %106 = vector.multi_reduction <maximumf>, %105, %cst_27 [2] : vector<2x8x8xf32> to vector<2x8xf32>
    %107 = vector.shape_cast %106 : vector<2x8xf32> to vector<2x8x1xf32>
    %108 = vector.broadcast %107 : vector<2x8x1xf32> to vector<2x8x8xf32>
    %109 = arith.subf %105, %108 : vector<2x8x8xf32>
    %110 = math.exp %109 : vector<2x8x8xf32>
    %cst_28 = arith.constant dense<0.000000e+00> : vector<2x8xf32>
    %111 = vector.multi_reduction <add>, %110, %cst_28 [2] : vector<2x8x8xf32> to vector<2x8xf32>
    %112 = vector.shape_cast %111 : vector<2x8xf32> to vector<2x8x1xf32>
    %113 = tpu.reciprocal %112 {approx = true} : vector<2x8x1xf32> -> vector<2x8x1xf32>
    %114 = vector.broadcast %113 : vector<2x8x1xf32> to vector<2x8x8xf32>
    %115 = arith.mulf %110, %114 : vector<2x8x8xf32>
    "tpu.trace_start"() <{level = 10 : i32, message = "bqk,bkd->bqd"}> : () -> ()
    %cst_29 = arith.constant dense<0.000000e+00> : vector<2x8x8xf32>
    %116 = tpu.matmul %115, %104, %cst_29 {dimension_numbers = #tpu.dot_dimension_numbers<[2], [1], [1], [2], [0, 0, 0, 1, 1, 2], [0], [0]>} : vector<2x8x8xf32>, vector<2x8x8xf32>, vector<2x8x8xf32> -> vector<2x8x8xf32>
    "tpu.trace_stop"() : () -> ()
    %117 = vector.shape_cast %116 : vector<2x8x8xf32> to vector<16x8xf32>
    %c0_30 = arith.constant 0 : index
    %c24 = arith.constant 24 : index
    %118 = vector.load %arg8[%c0_30, %c24] : memref<16x32xf32, #tpu.memory_space<vmem>>, vector<16x8xf32>
    tpu.vector_store %arg8[%c0_30, %c24], %117 {strides = array<i32>} : memref<16x32xf32, #tpu.memory_space<vmem>>, vector<16x8xf32>,
    %c0_31 = arith.constant 0 : index
    %c0_32 = arith.constant 0 : index
    %119 = vector.load %arg8[%c0_31, %c0_32] : memref<16x32xf32, #tpu.memory_space<vmem>>, vector<16x32xf32>
    %c0_33 = arith.constant 0 : index
    %c0_34 = arith.constant 0 : index
    %120 = vector.load %arg4[%c0_33, %c0_34] : memref<32x32xf32, #tpu.memory_space<vmem>>, vector<32x32xf32>
    %cst_35 = arith.constant dense<0.000000e+00> : vector<16x32xf32>
    %121 = tpu.matmul %119, %120, %cst_35 {dimension_numbers = #tpu.dot_dimension_numbers<[1], [0], [0], [1], [0, 0, 1, 1], [], []>} : vector<16x32xf32>, vector<32x32xf32>, vector<16x32xf32> -> vector<16x32xf32>
    %122 = vector.broadcast %7 : vector<1x32xf32> to vector<16x32xf32>
    %123 = arith.addf %121, %122 : vector<16x32xf32>
    %124 = arith.addf %0, %123 : vector<16x32xf32>
    %cst_36 = arith.constant dense<0.000000e+00> : vector<16xf32>
    %125 = vector.multi_reduction <add>, %124, %cst_36 [1] : vector<16x32xf32> to vector<16xf32>
    %126 = vector.shape_cast %125 : vector<16xf32> to vector<16x1xf32>
    %cst_37 = arith.constant 3.200000e+01 : f32
    %127 = vector.broadcast %cst_37 : f32 to vector<16x1xf32>
    %128 = arith.divf %126, %127 : vector<16x1xf32>
    %129 = arith.mulf %124, %124 : vector<16x32xf32>
    %cst_38 = arith.constant dense<0.000000e+00> : vector<16xf32>
    %130 = vector.multi_reduction <add>, %129, %cst_38 [1] : vector<16x32xf32> to vector<16xf32>
    %131 = vector.shape_cast %130 : vector<16xf32> to vector<16x1xf32>
    %cst_39 = arith.constant 3.200000e+01 : f32
    %132 = vector.broadcast %cst_39 : f32 to vector<16x1xf32>
    %133 = arith.divf %131, %132 : vector<16x1xf32>
    %134 = arith.mulf %128, %128 : vector<16x1xf32>
    %135 = arith.subf %133, %134 : vector<16x1xf32>
    %136 = vector.broadcast %128 : vector<16x1xf32> to vector<16x32xf32>
    %137 = arith.subf %124, %136 : vector<16x32xf32>
    %cst_40 = arith.constant 9.99999974E-6 : f32
    %138 = vector.broadcast %cst_40 : f32 to vector<16x1xf32>
    %139 = arith.addf %135, %138 : vector<16x1xf32>
    %140 = math.rsqrt %139 : vector<16x1xf32>
    %141 = vector.broadcast %140 : vector<16x1xf32> to vector<16x32xf32>
    %142 = arith.mulf %137, %141 : vector<16x32xf32>
    %143 = vector.broadcast %4 : vector<1x32xf32> to vector<16x32xf32>
    %144 = arith.mulf %142, %143 : vector<16x32xf32>
    %145 = vector.broadcast %5 : vector<1x32xf32> to vector<16x32xf32>
    %146 = arith.addf %144, %145 : vector<16x32xf32>
    %c0_41 = arith.constant 0 : index
    %c0_42 = arith.constant 0 : index
    %147 = vector.load %arg5[%c0_41, %c0_42] : memref<32x64xf32, #tpu.memory_space<vmem>>, vector<32x64xf32>
    %cst_43 = arith.constant dense<0.000000e+00> : vector<16x64xf32>
    %148 = tpu.matmul %146, %147, %cst_43 {dimension_numbers = #tpu.dot_dimension_numbers<[1], [0], [0], [1], [0, 0, 1, 1], [], []>} : vector<16x32xf32>, vector<32x64xf32>, vector<16x64xf32> -> vector<16x64xf32>
    %149 = vector.broadcast %8 : vector<1x64xf32> to vector<16x64xf32>
    %150 = arith.addf %148, %149 : vector<16x64xf32>
    %cst_44 = arith.constant 5.000000e-01 : f32
    %151 = vector.broadcast %cst_44 : f32 to vector<16x64xf32>
    %152 = arith.mulf %151, %150 : vector<16x64xf32>
    %cst_45 = arith.constant 4.471500e-02 : f32
    %153 = vector.broadcast %cst_45 : f32 to vector<16x64xf32>
    %154 = arith.mulf %153, %150 : vector<16x64xf32>
    %155 = arith.mulf %154, %150 : vector<16x64xf32>
    %156 = arith.mulf %155, %150 : vector<16x64xf32>
    %157 = arith.addf %150, %156 : vector<16x64xf32>
    %cst_46 = arith.constant 0.797884583 : f32
    %158 = vector.broadcast %cst_46 : f32 to vector<16x64xf32>
    %159 = arith.mulf %158, %157 : vector<16x64xf32>
    %160 = math.tanh %159 : vector<16x64xf32>
    %cst_47 = arith.constant 1.000000e+00 : f32
    %161 = vector.broadcast %cst_47 : f32 to vector<16x64xf32>
    %162 = arith.addf %161, %160 : vector<16x64xf32>
    %163 = arith.mulf %152, %162 : vector<16x64xf32>
    %c0_48 = arith.constant 0 : index
    %c0_49 = arith.constant 0 : index
    %164 = vector.load %arg6[%c0_48, %c0_49] : memref<64x32xf32, #tpu.memory_space<vmem>>, vector<64x32xf32>
    %cst_50 = arith.constant dense<0.000000e+00> : vector<16x32xf32>
    %165 = tpu.matmul %163, %164, %cst_50 {dimension_numbers = #tpu.dot_dimension_numbers<[1], [0], [0], [1], [0, 0, 1, 1], [], []>} : vector<16x64xf32>, vector<64x32xf32>, vector<16x32xf32> -> vector<16x32xf32>
    %166 = vector.broadcast %9 : vector<1x32xf32> to vector<16x32xf32>
    %167 = arith.addf %165, %166 : vector<16x32xf32>
    %168 = arith.addf %124, %167 : vector<16x32xf32>
    %169 = vector.shape_cast %168 : vector<16x32xf32> to vector<4x128xf32>
    %c0_51 = arith.constant 0 : index
    %c0_52 = arith.constant 0 : index
    %170 = vector.load %arg7[%c0_51, %c0_52] : memref<4x128xf32, #tpu.memory_space<vmem>>, vector<4x128xf32>
    tpu.vector_store %arg7[%c0_51, %c0_52], %169 {strides = array<i32>} : memref<4x128xf32, #tpu.memory_space<vmem>>, vector<4x128xf32>,
    return
  }
  func.func @transform_0(%arg0: i32) -> (i32, i32) {
    %c0_i32 = arith.constant 0 : i32
    %c0_i32_0 = arith.constant 0 : i32
    return %arg0, %c0_i32 : i32, i32
  }
  func.func @transform_1(%arg0: i32) -> (i32, i32) {
    %c0_i32 = arith.constant 0 : i32
    %c0_i32_0 = arith.constant 0 : i32
    %c0_i32_1 = arith.constant 0 : i32
    return %c0_i32, %c0_i32_0 : i32, i32
  }
  func.func @transform_2(%arg0: i32) -> (i32, i32) {
    %c0_i32 = arith.constant 0 : i32
    %c0_i32_0 = arith.constant 0 : i32
    %c0_i32_1 = arith.constant 0 : i32
    return %c0_i32, %c0_i32_0 : i32, i32
  }
  func.func @transform_3(%arg0: i32) -> (i32, i32) {
    %c0_i32 = arith.constant 0 : i32
    %c0_i32_0 = arith.constant 0 : i32
    %c0_i32_1 = arith.constant 0 : i32
    return %c0_i32, %c0_i32_0 : i32, i32
  }
  func.func @transform_4(%arg0: i32) -> (i32, i32) {
    %c0_i32 = arith.constant 0 : i32
    %c0_i32_0 = arith.constant 0 : i32
    %c0_i32_1 = arith.constant 0 : i32
    return %c0_i32, %c0_i32_0 : i32, i32
  }
  func.func @transform_5(%arg0: i32) -> (i32, i32) {
    %c0_i32 = arith.constant 0 : i32
    %c0_i32_0 = arith.constant 0 : i32
    %c0_i32_1 = arith.constant 0 : i32
    return %c0_i32, %c0_i32_0 : i32, i32
  }
  func.func @transform_6(%arg0: i32) -> (i32, i32) {
    %c0_i32 = arith.constant 0 : i32
    %c0_i32_0 = arith.constant 0 : i32
    return %arg0, %c0_i32 : i32, i32
  }
}

module attributes {stable_mosaic.version = 11 : i64} {
  func.func @_decoder_layer_kernel(%arg0: i32, %arg1: memref<16x32xf32, #tpu.memory_space<vmem>>, %arg2: memref<8x128xf32, #tpu.memory_space<vmem>>, %arg3: memref<32x96xf32, #tpu.memory_space<vmem>>, %arg4: memref<32x32xf32, #tpu.memory_space<vmem>>, %arg5: memref<32x64xf32, #tpu.memory_space<vmem>>, %arg6: memref<64x32xf32, #tpu.memory_space<vmem>>, %arg7: memref<16x32xf32, #tpu.memory_space<vmem>>, %arg8: memref<16x32xf32, #tpu.memory_space<vmem>>) attributes {dimension_semantics = [#tpu.dimension_semantics<parallel>], iteration_bounds = array<i64: 1>, scalar_prefetch = 0 : i64, scratch_operands = 1 : i64, tpu.core_type = #tpu.core_type<tc>, window_params = [{transform_indices = @transform_0, window_bounds = array<i64: 16, 32>}, {pipeline_mode = #tpu.pipeline_mode<synchronous>, transform_indices = @transform_1, window_bounds = array<i64: 8, 128>}, {pipeline_mode = #tpu.pipeline_mode<synchronous>, transform_indices = @transform_2, window_bounds = array<i64: 32, 96>}, {pipeline_mode = #tpu.pipeline_mode<synchronous>, transform_indices = @transform_3, window_bounds = array<i64: 32, 32>}, {pipeline_mode = #tpu.pipeline_mode<synchronous>, transform_indices = @transform_4, window_bounds = array<i64: 32, 64>}, {pipeline_mode = #tpu.pipeline_mode<synchronous>, transform_indices = @transform_5, window_bounds = array<i64: 64, 32>}, {transform_indices = @transform_6, window_bounds = array<i64: 16, 32>}]} {
    %c0 = arith.constant 0 : index
    %c0_0 = arith.constant 0 : index
    %0 = vector.load %arg1[%c0, %c0_0] : memref<16x32xf32, #tpu.memory_space<vmem>>, vector<16x32xf32>
    %c0_1 = arith.constant 0 : index
    %c0_2 = arith.constant 0 : index
    %1 = vector.load %arg2[%c0_1, %c0_2] : memref<8x128xf32, #tpu.memory_space<vmem>>, vector<8x128xf32>
    %2 = vector.extract_strided_slice %1 {offsets = [0, 0], sizes = [1, 32], strides = [1, 1]} : vector<8x128xf32> to vector<1x32xf32>
    %3 = vector.extract_strided_slice %1 {offsets = [1, 0], sizes = [1, 32], strides = [1, 1]} : vector<8x128xf32> to vector<1x32xf32>
    %4 = vector.extract_strided_slice %1 {offsets = [2, 0], sizes = [1, 32], strides = [1, 1]} : vector<8x128xf32> to vector<1x32xf32>
    %5 = vector.extract_strided_slice %1 {offsets = [3, 0], sizes = [1, 32], strides = [1, 1]} : vector<8x128xf32> to vector<1x32xf32>
    %6 = vector.extract_strided_slice %1 {offsets = [4, 0], sizes = [1, 96], strides = [1, 1]} : vector<8x128xf32> to vector<1x96xf32>
    %7 = vector.extract_strided_slice %1 {offsets = [5, 0], sizes = [1, 32], strides = [1, 1]} : vector<8x128xf32> to vector<1x32xf32>
    %8 = vector.extract_strided_slice %1 {offsets = [6, 0], sizes = [1, 64], strides = [1, 1]} : vector<8x128xf32> to vector<1x64xf32>
    %9 = vector.extract_strided_slice %1 {offsets = [7, 0], sizes = [1, 32], strides = [1, 1]} : vector<8x128xf32> to vector<1x32xf32>
    %cst = arith.constant dense<0.000000e+00> : vector<16xf32>
    %10 = vector.multi_reduction <add>, %0, %cst [1] : vector<16x32xf32> to vector<16xf32>
    %11 = vector.shape_cast %10 : vector<16xf32> to vector<16x1xf32>
    %cst_3 = arith.constant 3.200000e+01 : f32
    %12 = vector.broadcast %cst_3 : f32 to vector<16x1xf32>
    %13 = arith.divf %11, %12 : vector<16x1xf32>
    %14 = arith.mulf %0, %0 : vector<16x32xf32>
    %cst_4 = arith.constant dense<0.000000e+00> : vector<16xf32>
    %15 = vector.multi_reduction <add>, %14, %cst_4 [1] : vector<16x32xf32> to vector<16xf32>
    %16 = vector.shape_cast %15 : vector<16xf32> to vector<16x1xf32>
    %cst_5 = arith.constant 3.200000e+01 : f32
    %17 = vector.broadcast %cst_5 : f32 to vector<16x1xf32>
    %18 = arith.divf %16, %17 : vector<16x1xf32>
    %19 = arith.mulf %13, %13 : vector<16x1xf32>
    %20 = arith.subf %18, %19 : vector<16x1xf32>
    %21 = vector.broadcast %13 : vector<16x1xf32> to vector<16x32xf32>
    %22 = arith.subf %0, %21 : vector<16x32xf32>
    %cst_6 = arith.constant 9.99999974E-6 : f32
    %23 = vector.broadcast %cst_6 : f32 to vector<16x1xf32>
    %24 = arith.addf %20, %23 : vector<16x1xf32>
    %25 = math.rsqrt %24 : vector<16x1xf32>
    %26 = vector.broadcast %25 : vector<16x1xf32> to vector<16x32xf32>
    %27 = arith.mulf %22, %26 : vector<16x32xf32>
    %28 = vector.broadcast %2 : vector<1x32xf32> to vector<16x32xf32>
    %29 = arith.mulf %27, %28 : vector<16x32xf32>
    %30 = vector.broadcast %3 : vector<1x32xf32> to vector<16x32xf32>
    %31 = arith.addf %29, %30 : vector<16x32xf32>
    %c0_7 = arith.constant 0 : index
    %c0_8 = arith.constant 0 : index
    %32 = vector.load %arg3[%c0_7, %c0_8] : memref<32x96xf32, #tpu.memory_space<vmem>>, vector<32x96xf32>
    %cst_9 = arith.constant dense<0.000000e+00> : vector<16x96xf32>
    %33 = tpu.matmul %31, %32, %cst_9 {dimension_numbers = #tpu.dot_dimension_numbers<[1], [0], [0], [1], [0, 0, 1, 1], [], []>} : vector<16x32xf32>, vector<32x96xf32>, vector<16x96xf32> -> vector<16x96xf32>
    %34 = vector.broadcast %6 : vector<1x96xf32> to vector<16x96xf32>
    %35 = arith.addf %33, %34 : vector<16x96xf32>
    %36 = vector.extract_strided_slice %35 {offsets = [0, 0], sizes = [16, 32], strides = [1, 1]} : vector<16x96xf32> to vector<16x32xf32>
    %37 = vector.extract_strided_slice %35 {offsets = [0, 32], sizes = [16, 32], strides = [1, 1]} : vector<16x96xf32> to vector<16x32xf32>
    %38 = vector.extract_strided_slice %35 {offsets = [0, 64], sizes = [16, 32], strides = [1, 1]} : vector<16x96xf32> to vector<16x32xf32>
    %39 = vector.extract_strided_slice %36 {offsets = [0, 0], sizes = [16, 8], strides = [1, 1]} : vector<16x32xf32> to vector<16x8xf32>
    %40 = vector.shape_cast %39 : vector<16x8xf32> to vector<2x8x8xf32>
    %41 = vector.extract_strided_slice %37 {offsets = [0, 0], sizes = [16, 8], strides = [1, 1]} : vector<16x32xf32> to vector<16x8xf32>
    %42 = vector.shape_cast %41 : vector<16x8xf32> to vector<2x8x8xf32>
    %43 = vector.extract_strided_slice %38 {offsets = [0, 0], sizes = [16, 8], strides = [1, 1]} : vector<16x32xf32> to vector<16x8xf32>
    %44 = vector.shape_cast %43 : vector<16x8xf32> to vector<2x8x8xf32>
    "tpu.trace_start"() <{level = 10 : i32, message = "bqd,bkd->bqk"}> : () -> ()
    %cst_10 = arith.constant dense<0.000000e+00> : vector<2x8x8xf32>
    %45 = tpu.matmul %40, %42, %cst_10 {dimension_numbers = #tpu.dot_dimension_numbers<[2], [2], [1], [1], [0, 0, 0, 1, 1, 1], [0], [0]>} : vector<2x8x8xf32>, vector<2x8x8xf32>, vector<2x8x8xf32> -> vector<2x8x8xf32>
    "tpu.trace_stop"() : () -> ()
    %cst_11 = arith.constant dense<0xFF800000> : vector<2x8xf32>
    %46 = vector.multi_reduction <maximumf>, %45, %cst_11 [2] : vector<2x8x8xf32> to vector<2x8xf32>
    %47 = vector.shape_cast %46 : vector<2x8xf32> to vector<2x8x1xf32>
    %48 = vector.broadcast %47 : vector<2x8x1xf32> to vector<2x8x8xf32>
    %49 = arith.subf %45, %48 : vector<2x8x8xf32>
    %50 = math.exp %49 : vector<2x8x8xf32>
    %cst_12 = arith.constant dense<0.000000e+00> : vector<2x8xf32>
    %51 = vector.multi_reduction <add>, %50, %cst_12 [2] : vector<2x8x8xf32> to vector<2x8xf32>
    %52 = vector.shape_cast %51 : vector<2x8xf32> to vector<2x8x1xf32>
    %53 = tpu.reciprocal %52 {approx = true} : vector<2x8x1xf32> -> vector<2x8x1xf32>
    %54 = vector.broadcast %53 : vector<2x8x1xf32> to vector<2x8x8xf32>
    %55 = arith.mulf %50, %54 : vector<2x8x8xf32>
    "tpu.trace_start"() <{level = 10 : i32, message = "bqk,bkd->bqd"}> : () -> ()
    %cst_13 = arith.constant dense<0.000000e+00> : vector<2x8x8xf32>
    %56 = tpu.matmul %55, %44, %cst_13 {dimension_numbers = #tpu.dot_dimension_numbers<[2], [1], [1], [2], [0, 0, 0, 1, 1, 2], [0], [0]>} : vector<2x8x8xf32>, vector<2x8x8xf32>, vector<2x8x8xf32> -> vector<2x8x8xf32>
    "tpu.trace_stop"() : () -> ()
    %57 = vector.shape_cast %56 : vector<2x8x8xf32> to vector<16x8xf32>
    %c0_14 = arith.constant 0 : index
    %c0_15 = arith.constant 0 : index
    %58 = vector.load %arg8[%c0_14, %c0_15] : memref<16x32xf32, #tpu.memory_space<vmem>>, vector<16x8xf32>
    tpu.vector_store %arg8[%c0_14, %c0_15], %57 {strides = array<i32>} : memref<16x32xf32, #tpu.memory_space<vmem>>, vector<16x8xf32>,
    %59 = vector.extract_strided_slice %36 {offsets = [0, 8], sizes = [16, 8], strides = [1, 1]} : vector<16x32xf32> to vector<16x8xf32>
    %60 = vector.shape_cast %59 : vector<16x8xf32> to vector<2x8x8xf32>
    %61 = vector.extract_strided_slice %37 {offsets = [0, 8], sizes = [16, 8], strides = [1, 1]} : vector<16x32xf32> to vector<16x8xf32>
    %62 = vector.shape_cast %61 : vector<16x8xf32> to vector<2x8x8xf32>
    %63 = vector.extract_strided_slice %38 {offsets = [0, 8], sizes = [16, 8], strides = [1, 1]} : vector<16x32xf32> to vector<16x8xf32>
    %64 = vector.shape_cast %63 : vector<16x8xf32> to vector<2x8x8xf32>
    "tpu.trace_start"() <{level = 10 : i32, message = "bqd,bkd->bqk"}> : () -> ()
    %cst_16 = arith.constant dense<0.000000e+00> : vector<2x8x8xf32>
    %65 = tpu.matmul %60, %62, %cst_16 {dimension_numbers = #tpu.dot_dimension_numbers<[2], [2], [1], [1], [0, 0, 0, 1, 1, 1], [0], [0]>} : vector<2x8x8xf32>, vector<2x8x8xf32>, vector<2x8x8xf32> -> vector<2x8x8xf32>
    "tpu.trace_stop"() : () -> ()
    %cst_17 = arith.constant dense<0xFF800000> : vector<2x8xf32>
    %66 = vector.multi_reduction <maximumf>, %65, %cst_17 [2] : vector<2x8x8xf32> to vector<2x8xf32>
    %67 = vector.shape_cast %66 : vector<2x8xf32> to vector<2x8x1xf32>
    %68 = vector.broadcast %67 : vector<2x8x1xf32> to vector<2x8x8xf32>
    %69 = arith.subf %65, %68 : vector<2x8x8xf32>
    %70 = math.exp %69 : vector<2x8x8xf32>
    %cst_18 = arith.constant dense<0.000000e+00> : vector<2x8xf32>
    %71 = vector.multi_reduction <add>, %70, %cst_18 [2] : vector<2x8x8xf32> to vector<2x8xf32>
    %72 = vector.shape_cast %71 : vector<2x8xf32> to vector<2x8x1xf32>
    %73 = tpu.reciprocal %72 {approx = true} : vector<2x8x1xf32> -> vector<2x8x1xf32>
    %74 = vector.broadcast %73 : vector<2x8x1xf32> to vector<2x8x8xf32>
    %75 = arith.mulf %70, %74 : vector<2x8x8xf32>
    "tpu.trace_start"() <{level = 10 : i32, message = "bqk,bkd->bqd"}> : () -> ()
    %cst_19 = arith.constant dense<0.000000e+00> : vector<2x8x8xf32>
    %76 = tpu.matmul %75, %64, %cst_19 {dimension_numbers = #tpu.dot_dimension_numbers<[2], [1], [1], [2], [0, 0, 0, 1, 1, 2], [0], [0]>} : vector<2x8x8xf32>, vector<2x8x8xf32>, vector<2x8x8xf32> -> vector<2x8x8xf32>
    "tpu.trace_stop"() : () -> ()
    %77 = vector.shape_cast %76 : vector<2x8x8xf32> to vector<16x8xf32>
    %c0_20 = arith.constant 0 : index
    %c8 = arith.constant 8 : index
    %78 = vector.load %arg8[%c0_20, %c8] : memref<16x32xf32, #tpu.memory_space<vmem>>, vector<16x8xf32>
    tpu.vector_store %arg8[%c0_20, %c8], %77 {strides = array<i32>} : memref<16x32xf32, #tpu.memory_space<vmem>>, vector<16x8xf32>,
    %79 = vector.extract_strided_slice %36 {offsets = [0, 16], sizes = [16, 8], strides = [1, 1]} : vector<16x32xf32> to vector<16x8xf32>
    %80 = vector.shape_cast %79 : vector<16x8xf32> to vector<2x8x8xf32>
    %81 = vector.extract_strided_slice %37 {offsets = [0, 16], sizes = [16, 8], strides = [1, 1]} : vector<16x32xf32> to vector<16x8xf32>
    %82 = vector.shape_cast %81 : vector<16x8xf32> to vector<2x8x8xf32>
    %83 = vector.extract_strided_slice %38 {offsets = [0, 16], sizes = [16, 8], strides = [1, 1]} : vector<16x32xf32> to vector<16x8xf32>
    %84 = vector.shape_cast %83 : vector<16x8xf32> to vector<2x8x8xf32>
    "tpu.trace_start"() <{level = 10 : i32, message = "bqd,bkd->bqk"}> : () -> ()
    %cst_21 = arith.constant dense<0.000000e+00> : vector<2x8x8xf32>
    %85 = tpu.matmul %80, %82, %cst_21 {dimension_numbers = #tpu.dot_dimension_numbers<[2], [2], [1], [1], [0, 0, 0, 1, 1, 1], [0], [0]>} : vector<2x8x8xf32>, vector<2x8x8xf32>, vector<2x8x8xf32> -> vector<2x8x8xf32>
    "tpu.trace_stop"() : () -> ()
    %cst_22 = arith.constant dense<0xFF800000> : vector<2x8xf32>
    %86 = vector.multi_reduction <maximumf>, %85, %cst_22 [2] : vector<2x8x8xf32> to vector<2x8xf32>
    %87 = vector.shape_cast %86 : vector<2x8xf32> to vector<2x8x1xf32>
    %88 = vector.broadcast %87 : vector<2x8x1xf32> to vector<2x8x8xf32>
    %89 = arith.subf %85, %88 : vector<2x8x8xf32>
    %90 = math.exp %89 : vector<2x8x8xf32>
    %cst_23 = arith.constant dense<0.000000e+00> : vector<2x8xf32>
    %91 = vector.multi_reduction <add>, %90, %cst_23 [2] : vector<2x8x8xf32> to vector<2x8xf32>
    %92 = vector.shape_cast %91 : vector<2x8xf32> to vector<2x8x1xf32>
    %93 = tpu.reciprocal %92 {approx = true} : vector<2x8x1xf32> -> vector<2x8x1xf32>
    %94 = vector.broadcast %93 : vector<2x8x1xf32> to vector<2x8x8xf32>
    %95 = arith.mulf %90, %94 : vector<2x8x8xf32>
    "tpu.trace_start"() <{level = 10 : i32, message = "bqk,bkd->bqd"}> : () -> ()
    %cst_24 = arith.constant dense<0.000000e+00> : vector<2x8x8xf32>
    %96 = tpu.matmul %95, %84, %cst_24 {dimension_numbers = #tpu.dot_dimension_numbers<[2], [1], [1], [2], [0, 0, 0, 1, 1, 2], [0], [0]>} : vector<2x8x8xf32>, vector<2x8x8xf32>, vector<2x8x8xf32> -> vector<2x8x8xf32>
    "tpu.trace_stop"() : () -> ()
    %97 = vector.shape_cast %96 : vector<2x8x8xf32> to vector<16x8xf32>
    %c0_25 = arith.constant 0 : index
    %c16 = arith.constant 16 : index
    %98 = vector.load %arg8[%c0_25, %c16] : memref<16x32xf32, #tpu.memory_space<vmem>>, vector<16x8xf32>
    tpu.vector_store %arg8[%c0_25, %c16], %97 {strides = array<i32>} : memref<16x32xf32, #tpu.memory_space<vmem>>, vector<16x8xf32>,
    %99 = vector.extract_strided_slice %36 {offsets = [0, 24], sizes = [16, 8], strides = [1, 1]} : vector<16x32xf32> to vector<16x8xf32>
    %100 = vector.shape_cast %99 : vector<16x8xf32> to vector<2x8x8xf32>
    %101 = vector.extract_strided_slice %37 {offsets = [0, 24], sizes = [16, 8], strides = [1, 1]} : vector<16x32xf32> to vector<16x8xf32>
    %102 = vector.shape_cast %101 : vector<16x8xf32> to vector<2x8x8xf32>
    %103 = vector.extract_strided_slice %38 {offsets = [0, 24], sizes = [16, 8], strides = [1, 1]} : vector<16x32xf32> to vector<16x8xf32>
    %104 = vector.shape_cast %103 : vector<16x8xf32> to vector<2x8x8xf32>
    "tpu.trace_start"() <{level = 10 : i32, message = "bqd,bkd->bqk"}> : () -> ()
    %cst_26 = arith.constant dense<0.000000e+00> : vector<2x8x8xf32>
    %105 = tpu.matmul %100, %102, %cst_26 {dimension_numbers = #tpu.dot_dimension_numbers<[2], [2], [1], [1], [0, 0, 0, 1, 1, 1], [0], [0]>} : vector<2x8x8xf32>, vector<2x8x8xf32>, vector<2x8x8xf32> -> vector<2x8x8xf32>
    "tpu.trace_stop"() : () -> ()
    %cst_27 = arith.constant dense<0xFF800000> : vector<2x8xf32>
    %106 = vector.multi_reduction <maximumf>, %105, %cst_27 [2] : vector<2x8x8xf32> to vector<2x8xf32>
    %107 = vector.shape_cast %106 : vector<2x8xf32> to vector<2x8x1xf32>
    %108 = vector.broadcast %107 : vector<2x8x1xf32> to vector<2x8x8xf32>
    %109 = arith.subf %105, %108 : vector<2x8x8xf32>
    %110 = math.exp %109 : vector<2x8x8xf32>
    %cst_28 = arith.constant dense<0.000000e+00> : vector<2x8xf32>
    %111 = vector.multi_reduction <add>, %110, %cst_28 [2] : vector<2x8x8xf32> to vector<2x8xf32>
    %112 = vector.shape_cast %111 : vector<2x8xf32> to vector<2x8x1xf32>
    %113 = tpu.reciprocal %112 {approx = true} : vector<2x8x1xf32> -> vector<2x8x1xf32>
    %114 = vector.broadcast %113 : vector<2x8x1xf32> to vector<2x8x8xf32>
    %115 = arith.mulf %110, %114 : vector<2x8x8xf32>
    "tpu.trace_start"() <{level = 10 : i32, message = "bqk,bkd->bqd"}> : () -> ()
    %cst_29 = arith.constant dense<0.000000e+00> : vector<2x8x8xf32>
    %116 = tpu.matmul %115, %104, %cst_29 {dimension_numbers = #tpu.dot_dimension_numbers<[2], [1], [1], [2], [0, 0, 0, 1, 1, 2], [0], [0]>} : vector<2x8x8xf32>, vector<2x8x8xf32>, vector<2x8x8xf32> -> vector<2x8x8xf32>
    "tpu.trace_stop"() : () -> ()
    %117 = vector.shape_cast %116 : vector<2x8x8xf32> to vector<16x8xf32>
    %c0_30 = arith.constant 0 : index
    %c24 = arith.constant 24 : index
    %118 = vector.load %arg8[%c0_30, %c24] : memref<16x32xf32, #tpu.memory_space<vmem>>, vector<16x8xf32>
    tpu.vector_store %arg8[%c0_30, %c24], %117 {strides = array<i32>} : memref<16x32xf32, #tpu.memory_space<vmem>>, vector<16x8xf32>,
    %c0_31 = arith.constant 0 : index
    %c0_32 = arith.constant 0 : index
    %119 = vector.load %arg8[%c0_31, %c0_32] : memref<16x32xf32, #tpu.memory_space<vmem>>, vector<16x32xf32>
    %c0_33 = arith.constant 0 : index
    %c0_34 = arith.constant 0 : index
    %120 = vector.load %arg4[%c0_33, %c0_34] : memref<32x32xf32, #tpu.memory_space<vmem>>, vector<32x32xf32>
    %cst_35 = arith.constant dense<0.000000e+00> : vector<16x32xf32>
    %121 = tpu.matmul %119, %120, %cst_35 {dimension_numbers = #tpu.dot_dimension_numbers<[1], [0], [0], [1], [0, 0, 1, 1], [], []>} : vector<16x32xf32>, vector<32x32xf32>, vector<16x32xf32> -> vector<16x32xf32>
    %122 = vector.broadcast %7 : vector<1x32xf32> to vector<16x32xf32>
    %123 = arith.addf %121, %122 : vector<16x32xf32>
    %124 = arith.addf %0, %123 : vector<16x32xf32>
    %cst_36 = arith.constant dense<0.000000e+00> : vector<16xf32>
    %125 = vector.multi_reduction <add>, %124, %cst_36 [1] : vector<16x32xf32> to vector<16xf32>
    %126 = vector.shape_cast %125 : vector<16xf32> to vector<16x1xf32>
    %cst_37 = arith.constant 3.200000e+01 : f32
    %127 = vector.broadcast %cst_37 : f32 to vector<16x1xf32>
    %128 = arith.divf %126, %127 : vector<16x1xf32>
    %129 = arith.mulf %124, %124 : vector<16x32xf32>
    %cst_38 = arith.constant dense<0.000000e+00> : vector<16xf32>
    %130 = vector.multi_reduction <add>, %129, %cst_38 [1] : vector<16x32xf32> to vector<16xf32>
    %131 = vector.shape_cast %130 : vector<16xf32> to vector<16x1xf32>
    %cst_39 = arith.constant 3.200000e+01 : f32
    %132 = vector.broadcast %cst_39 : f32 to vector<16x1xf32>
    %133 = arith.divf %131, %132 : vector<16x1xf32>
    %134 = arith.mulf %128, %128 : vector<16x1xf32>
    %135 = arith.subf %133, %134 : vector<16x1xf32>
    %136 = vector.broadcast %128 : vector<16x1xf32> to vector<16x32xf32>
    %137 = arith.subf %124, %136 : vector<16x32xf32>
    %cst_40 = arith.constant 9.99999974E-6 : f32
    %138 = vector.broadcast %cst_40 : f32 to vector<16x1xf32>
    %139 = arith.addf %135, %138 : vector<16x1xf32>
    %140 = math.rsqrt %139 : vector<16x1xf32>
    %141 = vector.broadcast %140 : vector<16x1xf32> to vector<16x32xf32>
    %142 = arith.mulf %137, %141 : vector<16x32xf32>
    %143 = vector.broadcast %4 : vector<1x32xf32> to vector<16x32xf32>
    %144 = arith.mulf %142, %143 : vector<16x32xf32>
    %145 = vector.broadcast %5 : vector<1x32xf32> to vector<16x32xf32>
    %146 = arith.addf %144, %145 : vector<16x32xf32>
    %c0_41 = arith.constant 0 : index
    %c0_42 = arith.constant 0 : index
    %147 = vector.load %arg5[%c0_41, %c0_42] : memref<32x64xf32, #tpu.memory_space<vmem>>, vector<32x64xf32>
    %cst_43 = arith.constant dense<0.000000e+00> : vector<16x64xf32>
    %148 = tpu.matmul %146, %147, %cst_43 {dimension_numbers = #tpu.dot_dimension_numbers<[1], [0], [0], [1], [0, 0, 1, 1], [], []>} : vector<16x32xf32>, vector<32x64xf32>, vector<16x64xf32> -> vector<16x64xf32>
    %149 = vector.broadcast %8 : vector<1x64xf32> to vector<16x64xf32>
    %150 = arith.addf %148, %149 : vector<16x64xf32>
    %cst_44 = arith.constant 5.000000e-01 : f32
    %151 = vector.broadcast %cst_44 : f32 to vector<16x64xf32>
    %152 = arith.mulf %151, %150 : vector<16x64xf32>
    %cst_45 = arith.constant 4.471500e-02 : f32
    %153 = vector.broadcast %cst_45 : f32 to vector<16x64xf32>
    %154 = arith.mulf %153, %150 : vector<16x64xf32>
    %155 = arith.mulf %154, %150 : vector<16x64xf32>
    %156 = arith.mulf %155, %150 : vector<16x64xf32>
    %157 = arith.addf %150, %156 : vector<16x64xf32>
    %cst_46 = arith.constant 0.797884583 : f32
    %158 = vector.broadcast %cst_46 : f32 to vector<16x64xf32>
    %159 = arith.mulf %158, %157 : vector<16x64xf32>
    %160 = math.tanh %159 : vector<16x64xf32>
    %cst_47 = arith.constant 1.000000e+00 : f32
    %161 = vector.broadcast %cst_47 : f32 to vector<16x64xf32>
    %162 = arith.addf %161, %160 : vector<16x64xf32>
    %163 = arith.mulf %152, %162 : vector<16x64xf32>
    %c0_48 = arith.constant 0 : index
    %c0_49 = arith.constant 0 : index
    %164 = vector.load %arg6[%c0_48, %c0_49] : memref<64x32xf32, #tpu.memory_space<vmem>>, vector<64x32xf32>
    %cst_50 = arith.constant dense<0.000000e+00> : vector<16x32xf32>
    %165 = tpu.matmul %163, %164, %cst_50 {dimension_numbers = #tpu.dot_dimension_numbers<[1], [0], [0], [1], [0, 0, 1, 1], [], []>} : vector<16x64xf32>, vector<64x32xf32>, vector<16x32xf32> -> vector<16x32xf32>
    %166 = vector.broadcast %9 : vector<1x32xf32> to vector<16x32xf32>
    %167 = arith.addf %165, %166 : vector<16x32xf32>
    %168 = arith.addf %124, %167 : vector<16x32xf32>
    %c0_51 = arith.constant 0 : index
    %c0_52 = arith.constant 0 : index
    %169 = vector.load %arg7[%c0_51, %c0_52] : memref<16x32xf32, #tpu.memory_space<vmem>>, vector<16x32xf32>
    tpu.vector_store %arg7[%c0_51, %c0_52], %168 {strides = array<i32>} : memref<16x32xf32, #tpu.memory_space<vmem>>, vector<16x32xf32>,
    return
  }
  func.func @transform_0(%arg0: i32) -> (i32, i32) {
    %c0_i32 = arith.constant 0 : i32
    %c0_i32_0 = arith.constant 0 : i32
    return %arg0, %c0_i32 : i32, i32
  }
  func.func @transform_1(%arg0: i32) -> (i32, i32) {
    %c0_i32 = arith.constant 0 : i32
    %c0_i32_0 = arith.constant 0 : i32
    %c0_i32_1 = arith.constant 0 : i32
    return %c0_i32, %c0_i32_0 : i32, i32
  }
  func.func @transform_2(%arg0: i32) -> (i32, i32) {
    %c0_i32 = arith.constant 0 : i32
    %c0_i32_0 = arith.constant 0 : i32
    %c0_i32_1 = arith.constant 0 : i32
    return %c0_i32, %c0_i32_0 : i32, i32
  }
  func.func @transform_3(%arg0: i32) -> (i32, i32) {
    %c0_i32 = arith.constant 0 : i32
    %c0_i32_0 = arith.constant 0 : i32
    %c0_i32_1 = arith.constant 0 : i32
    return %c0_i32, %c0_i32_0 : i32, i32
  }
  func.func @transform_4(%arg0: i32) -> (i32, i32) {
    %c0_i32 = arith.constant 0 : i32
    %c0_i32_0 = arith.constant 0 : i32
    %c0_i32_1 = arith.constant 0 : i32
    return %c0_i32, %c0_i32_0 : i32, i32
  }
  func.func @transform_5(%arg0: i32) -> (i32, i32) {
    %c0_i32 = arith.constant 0 : i32
    %c0_i32_0 = arith.constant 0 : i32
    %c0_i32_1 = arith.constant 0 : i32
    return %c0_i32, %c0_i32_0 : i32, i32
  }
  func.func @transform_6(%arg0: i32) -> (i32, i32) {
    %c0_i32 = arith.constant 0 : i32
    %c0_i32_0 = arith.constant 0 : i32
    return %arg0, %c0_i32 : i32, i32
  }
}

</mosaic_0001>

<bundles_post_ra>
// kernel: tpu_custom_call.1
= control target key start
LH: loop header
LB: loop body
LE: loop exit
PB: predicated region body
PF: predicated region fallthrough
CT: control target
= control target key end

     0   :  { %11 = vsyncpa [#allocation4], 0  ;;  %s2647_s0 = inlined_call_operand.hbm [shape: f32[16,32], index: 0, kind: input, shape index: {}]   ;;  %s2648_s1 = inlined_call_operand.hbm [shape: f32[8,128], index: 1, kind: input, shape index: {}]   ;;  %s2649_s2 = inlined_call_operand.vmem [shape: f32[32,96], index: 2, kind: input, shape index: {}]   ;;  %s2650_s3 = inlined_call_operand.vmem [shape: f32[32,32], index: 3, kind: input, shape index: {}]   ;;  %s2651_s4 = inlined_call_operand.vmem [shape: f32[32,64], index: 4, kind: input, shape index: {}]   ;;  %s2652_s5 = inlined_call_operand.vmem [shape: f32[64,32], index: 5, kind: input, shape index: {}]   ;;  %s2653_s6 = inlined_call_operand.hbm [shape: f32[16,32], index: 6, kind: output, shape index: {}]  }
   0x1   :  { %12 = vsyncpa [#allocation7], 0 }
   0x2   :  { %13 = vsyncpa [#allocation5], 0  ;;  %s2298_s21 = smov [#allocation3]   ;;  %s2226_s25 = scalar_lea.hbm %s2647_s0, 256 }
   0x3   :  { %s19_s22 = sshll.u32 %s2298_s21, 4  ;;  %p2227_p0 = scmp.ne.s32.totalorder %s2647_s0, %s2226_s25  ;;  %s20_s22 = int_to_ptr.vmem [resolvable:$true] %s19_s22 }
   0x4   :  { %p2230_p1 = scmp.lt.u32.totalorder %s2226_s25, %s2647_s0 }
   0x6   :  { %p2232_p2 = pnand %p2230_p1, %p2227_p0 }
   0x8   :  { %2235 = shalt.err (!%p2232_p2)
}
   0x9   :  { %s2236_s30 = scalar_lea.vmem %s20_s22, 256  ;;  %p2241_p4 = scmp.lt.s32.totalorder %s20_s22, %s20_s22 }
   0xa   :  { %p2237_p3 = scmp.ne.s32.totalorder %s20_s22, %s2236_s30  ;;  %p2242_p5 = scmp.lt.s32.totalorder %s2236_s30, %s2236_s30 }
   0xc   :  { %p2243_p6 = por %p2242_p5, %p2241_p4 }
   0xe   :  { %p2244_p7 = pnand %p2243_p6, %p2237_p3 }
  0x10   :  { %2247 = shalt.err (!%p2244_p7)
}
  0x11   :  { %s2299_s7 = smov 128   ;;  %s2300_s8 = smov 8  }
  0x12   :  { %25 = dma.hbm_to_vmem [thread:$0]  %s2647_s0, 256, %s20_s22, [#allocation4], %s2299_s7, %s2299_s7, %s2300_s8  }
  0x13   :  { %s2301_s11 = smov [#allocation6]   ;;  %s2248_s15 = scalar_lea.hbm %s2648_s1, 128 }
  0x14   :  { %s32_s12 = sshll.u32 %s2301_s11, 4  ;;  %p2249_p8 = scmp.ne.s32.totalorder %s2648_s1, %s2248_s15  ;;  %s33_s12 = int_to_ptr.vmem [resolvable:$true] %s32_s12 }
  0x15   :  { %p2252_p9 = scmp.lt.u32.totalorder %s2248_s15, %s2648_s1 }
  0x17   :  { %p2254_p10 = pnand %p2252_p9, %p2249_p8 }
  0x19   :  { %2257 = shalt.err (!%p2254_p10)
}
  0x1a   :  { %s2258_s20 = scalar_lea.vmem %s33_s12, 128  ;;  %p2263_p12 = scmp.lt.s32.totalorder %s33_s12, %s33_s12 }
  0x1b   :  { %p2259_p11 = scmp.ne.s32.totalorder %s33_s12, %s2258_s20  ;;  %p2264_p13 = scmp.lt.s32.totalorder %s2258_s20, %s2258_s20 }
  0x1d   :  { %p2265_p0 = por %p2264_p13, %p2263_p12 }
  0x1f   :  { %p2266_p1 = pnand %p2265_p0, %p2259_p11 }
  0x21   :  { %2269 = shalt.err (!%p2266_p1)
}
  0x22   :  { %35 = dma.hbm_to_vmem [thread:$0]  %s2648_s1, 128, %s33_s12, [#allocation7]  }
  0x23   :  { %2292 = dma.done.wait [#allocation4], 256  }
  0x24   :  { %2293 = vsyncadd [#allocation4], 4294967040 }
  0x25   :  { %2294 = dma.done.wait [#allocation7], 128  }
  0x26   :  { %2295 = vsyncadd [#allocation7], 4294967168  ;;  %vm53_vm0 = vcmask 261120   ;;  %v2380_v0 = vld [vmem:[#allocation3] sm:$0xff]  ;;  %v2382_v1 = vld [vmem:[#allocation3 + $0x8] sm:$0xff]  ;;  %v85_v23 = vlaneseq  ;;  %v2302_v45 = vmov 0.0  }
  0x27   :  { %v54_v2 = vsel %vm53_vm0, %v2380_v0, 0.0  ;;  %v63_v3 = vmul.f32 %v2380_v0, %v2380_v0  ;;  %v64_v4 = vmul.f32 %v2382_v1, %v2382_v1  ;;  %v57_v6 = vsel %vm53_vm0, %v2382_v1, 0.0  ;;  %v97_v8 = vld [vmem:[%s2649_s2] sm:$0xff]  ;;  %v98_v9 = vld [vmem:[%s2649_s2 + $0x8] sm:$0xff]  ;;  %v99_v10 = vld [vmem:[%s2649_s2 + $0x10] sm:$0xff]  ;;  %2011 = vmatprep.subr.mxu0 %v2302_v45  ;;  %s2305_s29 = smov 64  }
  0x28   :  { %55 = vadd.xlane.f32.xlu0 %v54_v2  ;;  %v2122_v11 = vpack.c.bf16 %v98_v9, %v97_v8  ;;  %v100_v12 = vld [vmem:[%s2649_s2 + $0x18] sm:$0xff]  ;;  %v2406_v28 = vshrl.u32 %v85_v23, 7  ;;  %v2409_v31 = vld [vmem:[#allocation6] sm:$0xff]  ;;  %vm2303_vm1 = vmmov 0   ;;  %s2304_s2 = smov 96   ;;  %vm189_vm2 = vcmask 64512  }
  0x29   :  { %v65_v5 = vsel %vm53_vm0, %v63_v3, 0.0  ;;  %v68_v7 = vsel %vm53_vm0, %v64_v4, 0.0  ;;  %v2126_v13 = vpack.c.bf16 %v100_v12, %v99_v10  ;;  %2013 = vmatprep.mubr.msk.f32.mxu0 %vm2303_vm1, %v2302_v45  ;;  %s2306_s30 = smov 88   ;;  %s2307_s9 = smov 120   ;;  %vm855_vm3 = vcmask 130112  }
  0x2a   :  { %66 = vadd.xlane.f32.xlu1 %v65_v5  ;;  %2123 = vmatprep.subr.bf16.mxu1 %v2122_v11  ;;  %v87_v30 = vsub.s32 0, %v2406_v28  ;;  %v93_v32 = vsub.s32 1, %v2406_v28  ;;  %v103_v46 = vsub.s32 4, %v2406_v28  ;;  %s2308_s10 = smov 56   ;;  %s2309_s11 = smov 80   ;;  %vm1196_vm4 = vcmask 195712  }
  0x2b   :  { %2125 = vmatpush3.bf16.msra.mxu1 %v2122_v11  ;;  %s2310_s12 = smov 112   ;;  %s2311_s13 = smov 48   ;;  %vm1537_vm5 = vcmask 261312   ;;  %vm1794_vm6 = vcmask 523264  }
  0x2c   :  { %58 = vadd.xlane.f32.xlu0 %v57_v6  ;;  %2127 = vmatprep.subr.bf16.mxu1 %v2126_v13  ;;  %v88_v34 = vrot.slane %v2409_v31, %v87_v30  ;;  %v94_v37 = vrot.slane %v2409_v31, %v93_v32  ;;  %v104_v47 = vrot.slane %v2409_v31, %v103_v46  ;;  %s2312_s14 = smov 72   ;;  %s2313_s15 = smov 104  }
  0x2d   :  { %s2314_s16 = smov 40   ;;  %s2315_s17 = smov 16  }
  0x2e   :  { %69 = vadd.xlane.f32.xlu1 %v68_v7  ;;  %s2316_s24 = smov 24  }
  0x2f   :  { %2129 = vmatpush3.bf16.msra.mxu1 %v2126_v13 }
  0x30   :  { %2001 = vmatprep.subr.mxu1 %v2302_v45 }
  0xb5   :  { %v56_v14 = vpop.xlane.xlu0 %55 }
  0xb6   :  { %v61_v15 = vmul.f32 0.03125, %v56_v14 }
  0xb7   :  { %v67_v16 = vpop.xlane.xlu1 %66 }
  0xb8   :  { %v73_v17 = vmul.f32 %v61_v15, %v61_v15  ;;  %v71_v18 = vmul.f32 0.03125, %v67_v16  ;;  %v77_v33 = vsub.f32 %v2380_v0, %v61_v15 }
  0xb9   :  { %v59_v19 = vpop.xlane.xlu0 %58 }
  0xba   :  { %v75_v20 = vsub.f32 %v71_v18, %v73_v17  ;;  %v62_v21 = vmul.f32 0.03125, %v59_v19 }
  0xbb   :  { %v70_v22 = vpop.xlane.xlu1 %69 }
  0xbc   :  { %v79_v24 = vadd.f32 1e-05, %v75_v20  ;;  %v74_v25 = vmul.f32 %v62_v21, %v62_v21  ;;  %v72_v26 = vmul.f32 0.03125, %v70_v22  ;;  %v78_v38 = vsub.f32 %v2382_v1, %v62_v21 }
  0xbe   :  { %2182 = vrsqrt.f32 %v79_v24  ;;  %v76_v27 = vsub.f32 %v72_v26, %v74_v25 }
  0xc0   :  { %v80_v29 = vadd.f32 1e-05, %v76_v27 }
  0xc2   :  { %2184 = vrsqrt.f32 %v80_v29 }
  0xc8   :  { %v2183_v35 = vpop.eup %2182 }
  0xc9   :  { %v83_v36 = vmul.f32 %v2183_v35, %v77_v33 }
  0xcb   :  { %v89_v39 = vmul.f32 %v88_v34, %v83_v36 }
  0xcc   :  { %v2185_v40 = vpop.eup %2184 }
  0xcd   :  { %v84_v41 = vmul.f32 %v2185_v40, %v78_v38  ;;  %v95_v42 = vadd.f32 %v94_v37, %v89_v39 }
  0xcf   :  { %v90_v43 = vmul.f32 %v88_v34, %v84_v41  ;;  %1998 = vmatprep.mubr.msk.f32.mxu1 %vm53_vm0, %v95_v42 }
  0xd1   :  { %v96_v44 = vadd.f32 %v94_v37, %v90_v43 }
  0xd3   :  { %1999 = vmatmul.mubr.msk.f32.vlgmr.msra.gmra.mrb[0].mxu1 %vm53_vm0, %v96_v44 }
  0xd4   :  { %2003 = vmatprep.mubr.msk.f32.mxu1 %vm2303_vm1, %v2302_v45 }
 0x1a6   :  { %v2000_v48 = vpop.f32.mrb[0].mxu1 }
 0x1a7   :  { %v2426_v49 = vadd.f32 %v2000_v48, %v104_v47  ;;  %v177_v50 = vpop.f32.mrb[1].mxu1 }
 0x1a8   :  { %v2428_v51 = vadd.f32 %v177_v50, %v104_v47 }
 0x1a9   :  { %265 = vrot.lane.b32.xlu1 %v2426_v49, %s2304_s2 }
 0x1aa   :  { %187 = vrot.lane.b32.xlu0 %v2428_v51, %s2304_s2 }
 0x21b   :  { %v266_v53 = vpop.permute.xlu1 %265 }
 0x21c   :  { %v188_v52 = vpop.permute.xlu0 %187 }
 0x21d   :  { %2002 = vmatpush3.xpose.msk.msra.mxu1 %vm189_vm2, %v188_v52 }
 0x21e   :  { %2006 = vmatprep.subr.mxu1 %v2302_v45 }
 0x220   :  { %2004 = vmatmul.mubr.msk.f32.vlgmr.msra.gmra.mrb[2].mxu1 %vm189_vm2, %v2428_v51 }
 0x221   :  { %2007 = vmatpush3.xpose.msk.msra.mxu1 %vm189_vm2, %v266_v53  ;;  %2008 = vmatprep.mubr.msk.f32.mxu1 %vm2303_vm1, %v2302_v45 }
 0x222   :  { %2016 = vmatprep.subr.mxu1 %v2302_v45 }
 0x224   :  { %2009 = vmatmul.mubr.msk.f32.vlgmr.msra.gmra.mrb[4].mxu1 %vm189_vm2, %v2426_v49 }
 0x225   :  { %2018 = vmatprep.mubr.msk.f32.mxu1 %vm2303_vm1, %v2302_v45 }
 0x2f3   :  { %v260_v54 = vpop.f32.mrb[2].mxu1 }
 0x2f4   :  { %v2005_v55 = vpop.f32.mrb[3].mxu1  ;;  %v341_v56 = vsel %vm189_vm2, %v260_v54, -inf }
 0x2f5   :  { %342 = vmax.xlane.f32.xlu1 %v341_v56 }
 0x2f7   :  { %v337_v57 = vpop.f32.mrb[4].mxu1 }
 0x2f8   :  { %v2010_v58 = vpop.f32.mrb[5].mxu1  ;;  %v344_v59 = vsel %vm189_vm2, %v337_v57, -inf }
 0x2f9   :  { %345 = vmax.xlane.f32.xlu0 %v344_v59 }
 0x306   :  { %439 = vrot.lane.b32.xlu1 %v2426_v49, %s2305_s29 }
 0x30a   :  { %519 = vrot.lane.b32.xlu1 %v2428_v51, %s2306_s30 }
 0x30e   :  { %597 = vrot.lane.b32.xlu1 %v2426_v49, %s2306_s30 }
 0x30f   :  { %363 = vrot.lane.b32.xlu0 %v2428_v51, %s2305_s29 }
 0x382   :  { %v343_v60 = vpop.xlane.xlu1 %342 }
 0x383   :  { %v347_v61 = vsub.f32 %v260_v54, %v343_v60 }
 0x385   :  { %v349_v62 = vmul.f32 1.442695, %v347_v61 }
 0x386   :  { %v440_v63 = vpop.permute.xlu1 %439  ;;  %v346_v2 = vpop.xlane.xlu0 %345 }
 0x387   :  { %2186 = vpow2.f32 %v349_v62  ;;  %v348_v3 = vsub.f32 %v337_v57, %v346_v2  ;;  %2017 = vmatpush3.msra.mxu1 %v440_v63 }
 0x388   :  { %2026 = vmatprep.subr.mxu1 %v2302_v45 }
 0x389   :  { %v351_v4 = vmul.f32 1.442695, %v348_v3 }
 0x38a   :  { %v364_v5 = vpop.permute.xlu0 %363  ;;  %v520_v10 = vpop.permute.xlu1 %519 }
 0x38b   :  { %2188 = vpow2.f32 %v351_v4  ;;  %2012 = vmatpush3.msra.mxu0 %v364_v5 }
 0x38c   :  { %2021 = vmatprep.subr.mxu0 %v2302_v45 }
 0x38e   :  { %v598_v11 = vpop.permute.xlu1 %597 }
 0x391   :  { %v2187_v6 = vpop.eup %2186 }
 0x392   :  { %v353_v7 = vsel %vm189_vm2, %v2187_v6, 0.0 }
 0x393   :  { %354 = vadd.xlane.f32.xlu0 %v353_v7 }
 0x395   :  { %v2189_v8 = vpop.eup %2188 }
 0x396   :  { %v356_v9 = vsel %vm189_vm2, %v2189_v8, 0.0 }
 0x397   :  { %357 = vadd.xlane.f32.xlu1 %v356_v9 }
 0x3a8   :  { %595 = vrot.lane.b32.xlu1 %v2426_v49, %s2307_s9 }
 0x3a9   :  { %517 = vrot.lane.b32.xlu0 %v2428_v51, %s2307_s9 }
 0x420   :  { %v355_v12 = vpop.xlane.xlu0 %354 }
 0x421   :  { %2190 = vrcp.f32 %v355_v12 }
 0x424   :  { %v358_v13 = vpop.xlane.xlu1 %357  ;;  %v518_v18 = vpop.permute.xlu0 %517 }
 0x425   :  { %2192 = vrcp.f32 %v358_v13 }
 0x428   :  { %v596_v19 = vpop.permute.xlu1 %595 }
 0x42b   :  { %v2191_v14 = vpop.eup %2190 }
 0x42c   :  { %v361_v15 = vmul.f32 %v2191_v14, %v2187_v6 }
 0x42e   :  { %2014 = vmatmul.mubr.msk.f32.vlgmr.msra.gmra.mrb[0].mxu0 %vm189_vm2, %v361_v15 }
 0x42f   :  { %v2193_v16 = vpop.eup %2192  ;;  %2022 = vmatpush3.xpose.msk.msra.mxu0 %vm189_vm2, %v520_v10  ;;  %2023 = vmatprep.mubr.msk.f32.mxu0 %vm2303_vm1, %v2302_v45 }
 0x430   :  { %v362_v17 = vmul.f32 %v2193_v16, %v2189_v8  ;;  %2031 = vmatprep.subr.mxu0 %v2302_v45 }
 0x432   :  { %2019 = vmatmul.mubr.msk.f32.vlgmr.msra.gmra.mrb[6].mxu1 %vm189_vm2, %v362_v17  ;;  %2024 = vmatmul.mubr.msk.f32.vlgmr.msra.gmra.mrb[2].mxu0 %vm189_vm2, %v518_v18 }
 0x433   :  { %2027 = vmatpush3.xpose.msk.msra.mxu1 %vm189_vm2, %v598_v11  ;;  %2028 = vmatprep.mubr.msk.f32.mxu1 %vm2303_vm1, %v2302_v45 }
 0x434   :  { %2036 = vmatprep.subr.mxu1 %v2302_v45  ;;  %2033 = vmatprep.mubr.msk.f32.mxu0 %vm2303_vm1, %v2302_v45 }
 0x436   :  { %2029 = vmatmul.mubr.msk.f32.vlgmr.msra.gmra.mrb[8].mxu1 %vm189_vm2, %v596_v19 }
 0x437   :  { %2038 = vmatprep.mubr.msk.f32.mxu1 %vm2303_vm1, %v2302_v45 }
 0x501   :  { %v435_v20 = vpop.f32.mrb[0].mxu0 }
 0x502   :  { %515 = vst.msk [vmem:[#allocation2] sm:$0xff] %vm189_vm2, %v435_v20  ;;  %v2015_v21 = vpop.f32.mrb[1].mxu0 }
 0x505   :  { %v511_v22 = vpop.f32.mrb[6].mxu1  ;;  %v591_v23 = vpop.f32.mrb[2].mxu0 }
 0x506   :  { %516 = vst.msk [vmem:[#allocation2 + $0x8] sm:$0xff] %vm189_vm2, %v511_v22  ;;  %v2020_v24 = vpop.f32.mrb[7].mxu1  ;;  %v2025_v25 = vpop.f32.mrb[3].mxu0  ;;  %v673_v26 = vsel %vm189_vm2, %v591_v23, -inf }
 0x507   :  { %674 = vmax.xlane.f32.xlu0 %v673_v26 }
 0x509   :  { %v669_v27 = vpop.f32.mrb[8].mxu1 }
 0x50a   :  { %v2030_v29 = vpop.f32.mrb[9].mxu1  ;;  %v676_v30 = vsel %vm189_vm2, %v669_v27, -inf }
 0x50b   :  { %677 = vmax.xlane.f32.xlu1 %v676_v30 }
 0x51c   :  { %771 = vrot.lane.b32.xlu1 %v2426_v49, %s2308_s10 }
 0x51d   :  { %695 = vrot.lane.b32.xlu0 %v2428_v51, %s2308_s10 }
 0x520   :  { %860 = vrot.lane.b32.xlu1 %v2428_v51, %s2309_s11 }
 0x524   :  { %938 = vrot.lane.b32.xlu1 %v2426_v49, %s2309_s11 }
 0x528   :  { %936 = vrot.lane.b32.xlu1 %v2426_v49, %s2310_s12 }
 0x594   :  { %v675_v32 = vpop.xlane.xlu0 %674 }
 0x595   :  { %v679_v33 = vsub.f32 %v591_v23, %v675_v32 }
 0x597   :  { %v681_v34 = vmul.f32 1.442695, %v679_v33 }
 0x598   :  { %v696_v35 = vpop.permute.xlu0 %695  ;;  %v678_v36 = vpop.xlane.xlu1 %677 }
 0x599   :  { %2194 = vpow2.f32 %v681_v34  ;;  %v680_v37 = vsub.f32 %v669_v27, %v678_v36  ;;  %2032 = vmatpush3.msra.mxu0 %v696_v35 }
 0x59a   :  { %2041 = vmatprep.subr.mxu0 %v2302_v45 }
 0x59b   :  { %v683_v38 = vmul.f32 1.442695, %v680_v37 }
 0x59c   :  { %v772_v39 = vpop.permute.xlu1 %771 }
 0x59d   :  { %2196 = vpow2.f32 %v683_v38  ;;  %2037 = vmatpush3.msra.mxu1 %v772_v39 }
 0x59e   :  { %2046 = vmatprep.subr.mxu1 %v2302_v45 }
 0x5a0   :  { %v861_v47 = vpop.permute.xlu1 %860 }
 0x5a3   :  { %v2195_v40 = vpop.eup %2194 }
 0x5a4   :  { %v685_v41 = vsel %vm189_vm2, %v2195_v40, 0.0  ;;  %v939_v53 = vpop.permute.xlu1 %938 }
 0x5a5   :  { %686 = vadd.xlane.f32.xlu0 %v685_v41 }
 0x5a7   :  { %v2197_v42 = vpop.eup %2196 }
 0x5a8   :  { %v688_v43 = vsel %vm189_vm2, %v2197_v42, 0.0  ;;  %v937_v56 = vpop.permute.xlu1 %936 }
 0x5a9   :  { %689 = vadd.xlane.f32.xlu0 %v688_v43 }
 0x5bf   :  { %858 = vrot.lane.b32.xlu0 %v2428_v51, %s2310_s12 }
 0x632   :  { %v687_v44 = vpop.xlane.xlu0 %686 }
 0x633   :  { %2198 = vrcp.f32 %v687_v44 }
 0x636   :  { %v690_v46 = vpop.xlane.xlu0 %689 }
 0x637   :  { %2200 = vrcp.f32 %v690_v46 }
 0x63a   :  { %v859_v55 = vpop.permute.xlu0 %858 }
 0x63d   :  { %v2199_v48 = vpop.eup %2198 }
 0x63e   :  { %v693_v50 = vmul.f32 %v2199_v48, %v2195_v40 }
 0x640   :  { %2034 = vmatmul.mubr.msk.f32.vlgmr.msra.gmra.mrb[4].mxu0 %vm189_vm2, %v693_v50 }
 0x641   :  { %v2201_v52 = vpop.eup %2200  ;;  %2042 = vmatpush3.xpose.msk.msra.mxu0 %vm189_vm2, %v861_v47  ;;  %2043 = vmatprep.mubr.msk.f32.mxu0 %vm2303_vm1, %v2302_v45 }
 0x642   :  { %v694_v54 = vmul.f32 %v2201_v52, %v2197_v42  ;;  %2051 = vmatprep.subr.mxu0 %v2302_v45 }
 0x644   :  { %2039 = vmatmul.mubr.msk.f32.vlgmr.msra.gmra.mrb[10].mxu1 %vm189_vm2, %v694_v54  ;;  %2044 = vmatmul.mubr.msk.f32.vlgmr.msra.gmra.mrb[6].mxu0 %vm189_vm2, %v859_v55 }
 0x645   :  { %2047 = vmatpush3.xpose.msk.msra.mxu1 %vm189_vm2, %v939_v53  ;;  %2048 = vmatprep.mubr.msk.f32.mxu1 %vm2303_vm1, %v2302_v45 }
 0x646   :  { %2056 = vmatprep.subr.mxu1 %v2302_v45  ;;  %2053 = vmatprep.mubr.msk.f32.mxu0 %vm2303_vm1, %v2302_v45 }
 0x648   :  { %2049 = vmatmul.mubr.msk.f32.vlgmr.msra.gmra.mrb[12].mxu1 %vm189_vm2, %v937_v56 }
 0x649   :  { %2058 = vmatprep.mubr.msk.f32.mxu1 %vm2303_vm1, %v2302_v45 }
 0x713   :  { %v2502_v57 = vpop.f32.mrb[4].mxu0 }
 0x714   :  { %v2035_v58 = vpop.f32.mrb[5].mxu0 }
 0x717   :  { %v2504_v59 = vpop.f32.mrb[10].mxu1  ;;  %v932_v60 = vpop.f32.mrb[6].mxu0 }
 0x718   :  { %v2040_v61 = vpop.f32.mrb[11].mxu1  ;;  %v2045_v62 = vpop.f32.mrb[7].mxu0  ;;  %v1014_v63 = vsel %vm189_vm2, %v932_v60, -inf }
 0x719   :  { %1015 = vmax.xlane.f32.xlu0 %v1014_v63  ;;  %v1543_v62 = vld [vmem:[%s2650_s3 + $0x8] sm:$0xff] }
 0x71b   :  { %v1010_v2 = vpop.f32.mrb[12].mxu1 }
 0x71c   :  { %v2050_v3 = vpop.f32.mrb[13].mxu1  ;;  %v1017_v4 = vsel %vm189_vm2, %v1010_v2, -inf }
 0x71d   :  { %1018 = vmax.xlane.f32.xlu1 %v1017_v4  ;;  %v1545_v3 = vld [vmem:[%s2650_s3 + $0x18] sm:$0xff] }
 0x72e   :  { %1112 = vrot.lane.b32.xlu1 %v2426_v49, %s2311_s13 }
 0x72f   :  { %1036 = vrot.lane.b32.xlu0 %v2428_v51, %s2311_s13 }
 0x732   :  { %1201 = vrot.lane.b32.xlu1 %v2428_v51, %s2312_s14 }
 0x736   :  { %1279 = vrot.lane.b32.xlu1 %v2426_v49, %s2312_s14 }
 0x73a   :  { %1277 = vrot.lane.b32.xlu1 %v2426_v49, %s2313_s15 }
 0x7a6   :  { %v1016_v5 = vpop.xlane.xlu0 %1015 }
 0x7a7   :  { %v1020_v6 = vsub.f32 %v932_v60, %v1016_v5 }
 0x7a9   :  { %v1022_v7 = vmul.f32 1.442695, %v1020_v6 }
 0x7aa   :  { %v1037_v8 = vpop.permute.xlu0 %1036  ;;  %v1019_v9 = vpop.xlane.xlu1 %1018 }
 0x7ab   :  { %2202 = vpow2.f32 %v1022_v7  ;;  %v1021_v10 = vsub.f32 %v1010_v2, %v1019_v9  ;;  %2052 = vmatpush3.msra.mxu0 %v1037_v8  ;;  %v1544_v2 = vld [vmem:[%s2650_s3 + $0x10] sm:$0xff] }
 0x7ac   :  { %2061 = vmatprep.subr.mxu0 %v2302_v45  ;;  %v2134_v4 = vpack.c.bf16 %v1545_v3, %v1544_v2  ;;  %v1784_v2 = vld [vmem:[%s2652_s5 + $0x10] sm:$0xff]  ;;  %v1785_v3 = vld [vmem:[%s2652_s5 + $0x18] sm:$0xff] }
 0x7ad   :  { %v1024_v11 = vmul.f32 1.442695, %v1021_v10 }
 0x7ae   :  { %v1113_v12 = vpop.permute.xlu1 %1112 }
 0x7af   :  { %2204 = vpow2.f32 %v1024_v11  ;;  %2057 = vmatpush3.msra.mxu1 %v1113_v12 }
 0x7b0   :  { %2066 = vmatprep.subr.mxu1 %v2302_v45 }
 0x7b2   :  { %v1202_v19 = vpop.permute.xlu1 %1201 }
 0x7b5   :  { %v2203_v13 = vpop.eup %2202 }
 0x7b6   :  { %v1026_v14 = vsel %vm189_vm2, %v2203_v13, 0.0  ;;  %v1280_v23 = vpop.permute.xlu1 %1279 }
 0x7b7   :  { %1027 = vadd.xlane.f32.xlu0 %v1026_v14 }
 0x7b9   :  { %v2205_v15 = vpop.eup %2204 }
 0x7ba   :  { %v1029_v16 = vsel %vm189_vm2, %v2205_v15, 0.0  ;;  %v1278_v26 = vpop.permute.xlu1 %1277 }
 0x7bb   :  { %1030 = vadd.xlane.f32.xlu0 %v1029_v16 }
 0x7d1   :  { %1199 = vrot.lane.b32.xlu0 %v2428_v51, %s2313_s15 }
 0x844   :  { %v1028_v17 = vpop.xlane.xlu0 %1027 }
 0x845   :  { %2206 = vrcp.f32 %v1028_v17 }
 0x848   :  { %v1031_v18 = vpop.xlane.xlu0 %1030 }
 0x849   :  { %2208 = vrcp.f32 %v1031_v18 }
 0x84c   :  { %v1200_v25 = vpop.permute.xlu0 %1199 }
 0x84f   :  { %v2207_v20 = vpop.eup %2206 }
 0x850   :  { %v1034_v21 = vmul.f32 %v2207_v20, %v2203_v13  ;;  %v1548_v13 = vsub.s32 5, %v2406_v28 }
 0x852   :  { %2054 = vmatmul.mubr.msk.f32.vlgmr.msra.gmra.mrb[8].mxu0 %vm189_vm2, %v1034_v21  ;;  %v1549_v14 = vrot.slane %v2409_v31, %v1548_v13 }
 0x853   :  { %v2209_v22 = vpop.eup %2208  ;;  %2062 = vmatpush3.xpose.msk.msra.mxu0 %vm189_vm2, %v1202_v19  ;;  %2063 = vmatprep.mubr.msk.f32.mxu0 %vm2303_vm1, %v2302_v45 }
 0x854   :  { %v1035_v24 = vmul.f32 %v2209_v22, %v2205_v15  ;;  %2071 = vmatprep.subr.mxu0 %v2302_v45 }
 0x856   :  { %2059 = vmatmul.mubr.msk.f32.vlgmr.msra.gmra.mrb[14].mxu1 %vm189_vm2, %v1035_v24  ;;  %2064 = vmatmul.mubr.msk.f32.vlgmr.msra.gmra.mrb[10].mxu0 %vm189_vm2, %v1200_v25  ;;  %v1675_v25 = vld [vmem:[%s2651_s4] sm:$0xff] }
 0x857   :  { %2067 = vmatpush3.xpose.msk.msra.mxu1 %vm189_vm2, %v1280_v23  ;;  %2068 = vmatprep.mubr.msk.f32.mxu1 %vm2303_vm1, %v2302_v45 }
 0x858   :  { %2076 = vmatprep.subr.mxu1 %v2302_v45  ;;  %2073 = vmatprep.mubr.msk.f32.mxu0 %vm2303_vm1, %v2302_v45 }
 0x85a   :  { %2069 = vmatmul.mubr.msk.f32.vlgmr.msra.gmra.mrb[16].mxu1 %vm189_vm2, %v1278_v26  ;;  %v1676_v26 = vld [vmem:[%s2651_s4 + $0x8] sm:$0xff] }
 0x85b   :  { %2078 = vmatprep.mubr.msk.f32.mxu1 %vm2303_vm1, %v2302_v45 }
 0x925   :  { %v1108_v27 = vpop.f32.mrb[8].mxu0 }
 0x926   :  { %v2055_v29 = vpop.f32.mrb[9].mxu0 }
 0x927   :  { %v1677_v29 = vld [vmem:[%s2651_s4 + $0x10] sm:$0xff] }
 0x929   :  { %v1184_v30 = vpop.f32.mrb[14].mxu1  ;;  %v1273_v32 = vpop.f32.mrb[10].mxu0 }
 0x92a   :  { %v2060_v33 = vpop.f32.mrb[15].mxu1  ;;  %v2065_v34 = vpop.f32.mrb[11].mxu0  ;;  %v1355_v35 = vsel %vm189_vm2, %v1273_v32, -inf }
 0x92b   :  { %1356 = vmax.xlane.f32.xlu0 %v1355_v35 }
 0x92d   :  { %v1351_v36 = vpop.f32.mrb[16].mxu1 }
 0x92e   :  { %v2070_v37 = vpop.f32.mrb[17].mxu1  ;;  %v1358_v38 = vsel %vm189_vm2, %v1351_v36, -inf }
 0x92f   :  { %1359 = vmax.xlane.f32.xlu1 %v1358_v38 }
 0x940   :  { %1453 = vrot.lane.b32.xlu1 %v2426_v49, %s2314_s16 }
 0x944   :  { %849 = vrot.lane.b32.xlu1 %v2502_v57, %s2300_s8 }
 0x948   :  { %851 = vrot.lane.b32.xlu1 %v2504_v59, %s2300_s8 }
 0x94c   :  { %1192 = vrot.lane.b32.xlu1 %v1184_v30, %s2315_s17  ;;  %v1678_v30 = vld [vmem:[%s2651_s4 + $0x18] sm:$0xff] }
 0x9b8   :  { %v1357_v45 = vpop.xlane.xlu0 %1356 }
 0x9b9   :  { %v1361_v39 = vsub.f32 %v1273_v32, %v1357_v45  ;;  %v2142_v32 = vpack.c.bf16 %v1678_v30, %v1677_v29 }
 0x9bb   :  { %v1363_v40 = vmul.f32 1.442695, %v1361_v39 }
 0x9bc   :  { %v1360_v41 = vpop.xlane.xlu1 %1359 }
 0x9bd   :  { %2210 = vpow2.f32 %v1363_v40  ;;  %v1362_v42 = vsub.f32 %v1351_v36, %v1360_v41 }
 0x9bf   :  { %v1365_v43 = vmul.f32 1.442695, %v1362_v42 }
 0x9c0   :  { %v1454_v44 = vpop.permute.xlu1 %1453 }
 0x9c1   :  { %2212 = vpow2.f32 %v1365_v43  ;;  %2077 = vmatpush3.msra.mxu1 %v1454_v44 }
 0x9c4   :  { %v850_v49 = vpop.permute.xlu1 %849 }
 0x9c5   :  { %856 = vst.msk [vmem:[#allocation2] sm:$0xff] %vm855_vm3, %v850_v49 }
 0x9c7   :  { %v2211_v46 = vpop.eup %2210 }
 0x9c8   :  { %v852_v47 = vpop.permute.xlu1 %851  ;;  %v1367_v48 = vsel %vm189_vm2, %v2211_v46, 0.0 }
 0x9c9   :  { %857 = vst.msk [vmem:[#allocation2 + $0x8] sm:$0xff] %vm855_vm3, %v852_v47  ;;  %1368 = vadd.xlane.f32.xlu0 %v1367_v48  ;;  %v1671_v47 = vsub.s32 3, %v2406_v28 }
 0x9cb   :  { %v2213_v50 = vpop.eup %2212 }
 0x9cc   :  { %v1193_v52 = vpop.permute.xlu1 %1192  ;;  %v1370_v53 = vsel %vm189_vm2, %v2213_v50, 0.0 }
 0x9cd   :  { %1198 = vst.msk [vmem:[#allocation2 + $0x8] sm:$0xff] %vm1196_vm4, %v1193_v52  ;;  %1371 = vadd.xlane.f32.xlu0 %v1370_v53 }
 0x9e3   :  { %1377 = vrot.lane.b32.xlu0 %v2428_v51, %s2314_s16  ;;  %v1542_v51 = vld [vmem:[%s2650_s3] sm:$0xff] }
 0x9e4   :  { %v2130_v63 = vpack.c.bf16 %v1543_v62, %v1542_v51  ;;  %v1782_v51 = vld [vmem:[%s2652_s5] sm:$0xff]  ;;  %v1783_v62 = vld [vmem:[%s2652_s5 + $0x8] sm:$0xff] }
 0x9e7   :  { %1190 = vrot.lane.b32.xlu0 %v1108_v27, %s2315_s17  ;;  %v2138_v27 = vpack.c.bf16 %v1676_v26, %v1675_v25 }
 0x9e9   :  { %2139 = vmatprep.subr.bf16.mxu1 %v2138_v27 }
 0xa56   :  { %v1369_v54 = vpop.xlane.xlu0 %1368 }
 0xa57   :  { %2214 = vrcp.f32 %v1369_v54  ;;  %v1672_v54 = vrot.slane %v2409_v31, %v1671_v47 }
 0xa5a   :  { %v1372_v55 = vpop.xlane.xlu0 %1371 }
 0xa5b   :  { %2216 = vrcp.f32 %v1372_v55 }
 0xa5e   :  { %v1378_v56 = vpop.permute.xlu0 %1377 }
 0xa5f   :  { %2072 = vmatpush3.msra.mxu0 %v1378_v56 }
 0xa60   :  { %2131 = vmatprep.subr.bf16.mxu0 %v2130_v63 }
 0xa61   :  { %v2215_v57 = vpop.eup %2214 }
 0xa62   :  { %v1375_v58 = vmul.f32 %v2215_v57, %v2211_v46  ;;  %v1191_v59 = vpop.permute.xlu0 %1190  ;;  %v1665_v46 = vsub.s32 2, %v2406_v28 }
 0xa63   :  { %1197 = vst.msk [vmem:[#allocation2] sm:$0xff] %vm1196_vm4, %v1191_v59 }
 0xa64   :  { %2074 = vmatmul.mubr.msk.f32.vlgmr.msra.gmra.mrb[12].mxu0 %vm189_vm2, %v1375_v58 }
 0xa65   :  { %v2217_v60 = vpop.eup %2216  ;;  %2133 = vmatpush3.bf16.msra.mxu0 %v2130_v63  ;;  %v2146_v63 = vpack.c.bf16 %v1783_v62, %v1782_v51 }
 0xa66   :  { %v1376_v61 = vmul.f32 %v2217_v60, %v2213_v50  ;;  %2135 = vmatprep.subr.bf16.mxu0 %v2134_v4  ;;  %v1666_v50 = vrot.slane %v2409_v31, %v1665_v46 }
 0xa68   :  { %2079 = vmatmul.mubr.msk.f32.vlgmr.msra.gmra.mrb[18].mxu1 %vm189_vm2, %v1376_v61 }
 0xa69   :  { %2137 = vmatpush3.bf16.msra.mxu0 %v2134_v4  ;;  %2141 = vmatpush3.bf16.msra.mxu1 %v2138_v27  ;;  %v2150_v4 = vpack.c.bf16 %v1785_v3, %v1784_v2 }
 0xa6a   :  { %2143 = vmatprep.subr.bf16.mxu1 %v2142_v32  ;;  %2147 = vmatprep.subr.bf16.mxu0 %v2146_v63 }
 0xa6d   :  { %2145 = vmatpush3.bf16.msra.mxu1 %v2142_v32 }
 0xb37   :  { %v1449_v5 = vpop.f32.mrb[12].mxu0 }
 0xb38   :  { %1531 = vrot.lane.b32.xlu0 %v1449_v5, %s2316_s24  ;;  %v2075_v6 = vpop.f32.mrb[13].mxu0  ;;  %v1786_v5 = vld [vmem:[%s2652_s5 + $0x20] sm:$0xff] }
 0xb39   :  { %v1787_v6 = vld [vmem:[%s2652_s5 + $0x28] sm:$0xff] }
 0xb3b   :  { %v1525_v7 = vpop.f32.mrb[18].mxu1 }
 0xb3c   :  { %1533 = vrot.lane.b32.xlu1 %v1525_v7, %s2316_s24  ;;  %v2080_v8 = vpop.f32.mrb[19].mxu1  ;;  %v2154_v7 = vpack.c.bf16 %v1787_v6, %v1786_v5 }
 0xb3d   :  { %v1788_v8 = vld [vmem:[%s2652_s5 + $0x30] sm:$0xff] }
 0xbaa   :  { %v1532_v9 = vpop.permute.xlu0 %1531 }
 0xbab   :  { %1538 = vst.msk [vmem:[#allocation2] sm:$0xff] %vm1537_vm5, %v1532_v9  ;;  %v1789_v9 = vld [vmem:[%s2652_s5 + $0x38] sm:$0xff]  ;;  %s2317_s5 = smov [#allocation8]  }
 0xbac   :  { %s1885_s22 = sshll.u32 %s2317_s5, 4  ;;  %s1886_s22 = int_to_ptr.vmem [resolvable:$true] %s1885_s22 }
 0xbad   :  { %s2270_s23 = scalar_lea.vmem %s1886_s22, 256  ;;  %p2275_p3 = scmp.lt.s32.totalorder %s1886_s22, %s1886_s22 }
 0xbae   :  { %v1534_v10 = vpop.permute.xlu1 %1533  ;;  %p2271_p2 = scmp.ne.s32.totalorder %s1886_s22, %s2270_s23  ;;  %p2276_p4 = scmp.lt.s32.totalorder %s2270_s23, %s2270_s23 }
 0xbaf   :  { %1539 = vst.msk [vmem:[#allocation2 + $0x8] sm:$0xff] %vm1537_vm5, %v1534_v10  ;;  %v2158_v10 = vpack.c.bf16 %v1789_v9, %v1788_v8 }
 0xbb0   :  { %p2277_p5 = por %p2276_p4, %p2275_p3 }
 0xbb2   :  { %v1540_v11 = vld [vmem:[#allocation2] sm:$0xff]  ;;  %p2278_p6 = pnand %p2277_p5, %p2271_p2 }
 0xbb3   :  { %2089 = vmatprep.mubr.msk.f32.mxu0 %vm53_vm0, %v1540_v11  ;;  %v1681_v11 = vsub.s32 6, %v2406_v28 }
 0xbb6   :  { %v1541_v12 = vld [vmem:[#allocation2 + $0x8] sm:$0xff] }
 0xbb7   :  { %2090 = vmatmul.mubr.msk.f32.vlgmr.msra.gmra.mrb[14].mxu0 %vm53_vm0, %v1541_v12  ;;  %v1682_v12 = vrot.slane %v2409_v31, %v1681_v11 }
 0xbb8   :  { %2149 = vmatpush3.bf16.msra.mxu0 %v2146_v63 }
 0xbb9   :  { %2151 = vmatprep.subr.bf16.mxu0 %v2150_v4 }
 0xbbc   :  { %2153 = vmatpush3.bf16.msra.mxu0 %v2150_v4 }
 0xbbd   :  { %2155 = vmatprep.subr.bf16.mxu0 %v2154_v7 }
 0xbc0   :  { %2157 = vmatpush3.bf16.msra.mxu0 %v2154_v7 }
 0xbc1   :  { %2159 = vmatprep.subr.bf16.mxu0 %v2158_v10 }
 0xbc4   :  { %2161 = vmatpush3.bf16.msra.mxu0 %v2158_v10 }
 0xc8a   :  { %v2091_v15 = vpop.f32.mrb[14].mxu0 }
 0xc8b   :  { %v1628_v16 = vadd.f32 %v2091_v15, %v1549_v14  ;;  %v1622_v17 = vpop.f32.mrb[15].mxu0 }
 0xc8c   :  { %v1623_v18 = vadd.f32 %v1622_v17, %v1549_v14 }
 0xc8d   :  { %v2565_v19 = vadd.f32 %v1628_v16, %v2382_v1 }
 0xc8e   :  { %v2568_v20 = vadd.f32 %v1623_v18, %v2380_v0 }
 0xc8f   :  { %v1636_v21 = vsel %vm53_vm0, %v2565_v19, 0.0  ;;  %v1642_v1 = vmul.f32 %v2565_v19, %v2565_v19 }
 0xc90   :  { %1637 = vadd.xlane.f32.xlu1 %v1636_v21  ;;  %v1633_v22 = vsel %vm53_vm0, %v2568_v20, 0.0  ;;  %v1641_v23 = vmul.f32 %v2568_v20, %v2568_v20 }
 0xc91   :  { %1634 = vadd.xlane.f32.xlu0 %v1633_v22  ;;  %v1646_v0 = vsel %vm53_vm0, %v1642_v1, 0.0 }
 0xc92   :  { %v1643_v24 = vsel %vm53_vm0, %v1641_v23, 0.0 }
 0xc95   :  { %1644 = vadd.xlane.f32.xlu0 %v1643_v24 }
 0xc99   :  { %1647 = vadd.xlane.f32.xlu0 %v1646_v0 }
 0xd1d   :  { %v1638_v35 = vpop.xlane.xlu1 %1637 }
 0xd1e   :  { %v1635_v33 = vpop.xlane.xlu0 %1634  ;;  %v1640_v37 = vmul.f32 0.03125, %v1638_v35 }
 0xd1f   :  { %v1639_v34 = vmul.f32 0.03125, %v1635_v33 }
 0xd20   :  { %v1652_v41 = vmul.f32 %v1640_v37, %v1640_v37  ;;  %v1656_v55 = vsub.f32 %v2565_v19, %v1640_v37  ;;  %v1792_v37 = vsub.s32 7, %v2406_v28 }
 0xd21   :  { %v1651_v38 = vmul.f32 %v1639_v34, %v1639_v34  ;;  %v1655_v48 = vsub.f32 %v2568_v20, %v1639_v34 }
 0xd22   :  { %v1645_v36 = vpop.xlane.xlu0 %1644 }
 0xd23   :  { %v1649_v45 = vmul.f32 0.03125, %v1645_v36 }
 0xd25   :  { %v1653_v39 = vsub.f32 %v1649_v45, %v1651_v38  ;;  %v1793_v38 = vrot.slane %v2409_v31, %v1792_v37 }
 0xd26   :  { %v1648_v40 = vpop.xlane.xlu0 %1647 }
 0xd27   :  { %v1657_v42 = vadd.f32 1e-05, %v1653_v39  ;;  %v1650_v43 = vmul.f32 0.03125, %v1648_v40 }
 0xd29   :  { %2218 = vrsqrt.f32 %v1657_v42  ;;  %v1654_v44 = vsub.f32 %v1650_v43, %v1652_v41 }
 0xd2b   :  { %v1658_v49 = vadd.f32 1e-05, %v1654_v44 }
 0xd2d   :  { %2220 = vrsqrt.f32 %v1658_v49 }
 0xd33   :  { %v2219_v52 = vpop.eup %2218 }
 0xd34   :  { %v1661_v53 = vmul.f32 %v2219_v52, %v1655_v48 }
 0xd36   :  { %v1667_v56 = vmul.f32 %v1666_v50, %v1661_v53 }
 0xd37   :  { %v2221_v57 = vpop.eup %2220 }
 0xd38   :  { %v1662_v58 = vmul.f32 %v2221_v57, %v1656_v55  ;;  %v1673_v59 = vadd.f32 %v1672_v54, %v1667_v56 }
 0xd3a   :  { %v1668_v60 = vmul.f32 %v1666_v50, %v1662_v58  ;;  %2100 = vmatprep.mubr.msk.f32.mxu1 %vm53_vm0, %v1673_v59 }
 0xd3c   :  { %v1674_v61 = vadd.f32 %v1672_v54, %v1668_v60 }
 0xd3e   :  { %2101 = vmatmul.mubr.msk.f32.vlgmr.msra.gmra.mrb[20].mxu1 %vm53_vm0, %v1674_v61 }
 0xe11   :  { %v2102_v13 = vpop.f32.mrb[20].mxu1 }
 0xe12   :  { %v1761_v14 = vadd.f32 %v2102_v13, %v1682_v12  ;;  %v1755_v15 = vpop.f32.mrb[21].mxu1 }
 0xe13   :  { %v1756_v16 = vadd.f32 %v1755_v15, %v1682_v12 }
 0xe14   :  { %v1767_v17 = vmul.f32 0.044715, %v1761_v14  ;;  %v1765_v34 = vmul.f32 0.5, %v1761_v14 }
 0xe15   :  { %v1766_v18 = vmul.f32 0.044715, %v1756_v16  ;;  %v1764_v32 = vmul.f32 0.5, %v1756_v16 }
 0xe16   :  { %v1769_v21 = vmul.f32 %v1767_v17, %v1761_v14 }
 0xe17   :  { %v1768_v22 = vmul.f32 %v1766_v18, %v1756_v16 }
 0xe18   :  { %v1771_v23 = vmul.f32 %v1769_v21, %v1761_v14 }
 0xe19   :  { %v1770_v24 = vmul.f32 %v1768_v22, %v1756_v16 }
 0xe1a   :  { %v1773_v1 = vadd.f32 %v1771_v23, %v1761_v14 }
 0xe1b   :  { %v1772_v0 = vadd.f32 %v1770_v24, %v1756_v16 }
 0xe1c   :  { %v1775_v25 = vmul.f32 0.7978846, %v1773_v1 }
 0xe1d   :  { %v1774_v26 = vmul.f32 0.7978846, %v1772_v0 }
 0xe1e   :  { %2222 = vtanh.f32 %v1775_v25 }
 0xe1f   :  { %2224 = vtanh.f32 %v1774_v26 }
 0xe28   :  { %v2223_v27 = vpop.eup %2222 }
 0xe29   :  { %v2225_v29 = vpop.eup %2224  ;;  %v1779_v30 = vadd.f32 1.0, %v2223_v27 }
 0xe2a   :  { %v1778_v33 = vadd.f32 1.0, %v2225_v29 }
 0xe2b   :  { %v1781_v36 = vmul.f32 %v1779_v30, %v1765_v34 }
 0xe2c   :  { %v1780_v35 = vmul.f32 %v1778_v33, %v1764_v32 }
 0xe2e   :  { %2119 = vmatprep.mubr.msk.f32.mxu0 %vm1794_vm6, %v1780_v35 }
 0xe2f   :  { %2120 = vmatmul.mubr.msk.f32.vlgmr.msra.gmra.mrb[16].mxu0 %vm1794_vm6, %v1781_v36 }
 0xf02   :  { %v2121_v45 = vpop.f32.mrb[16].mxu0 }
 0xf03   :  { %v1873_v39 = vadd.f32 %v2121_v45, %v1793_v38  ;;  %v1867_v40 = vpop.f32.mrb[17].mxu0 }
 0xf04   :  { %v1868_v41 = vadd.f32 %v1867_v40, %v1793_v38 }
 0xf05   :  { %v1877_v42 = vadd.f32 %v1873_v39, %v2565_v19 }
 0xf06   :  { %v1876_v43 = vadd.f32 %v1868_v41, %v2568_v20 }
 0xf07   :  { %1879 = vst.msk [vmem:[#allocation8 + $0x8] sm:$0xff] %vm53_vm0, %v1877_v42 }
 0xf08   :  { %1878 = vst.msk [vmem:[#allocation8] sm:$0xff] %vm53_vm0, %v1876_v43 }
 0xf09   :  { %2281 = shalt.err (!%p2278_p6)
}
 0xf0a   :  { %s2282_s25 = scalar_lea.hbm %s2653_s6, 256 }
 0xf0b   :  { %p2283_p7 = scmp.ne.s32.totalorder %s2653_s6, %s2282_s25  ;;  %p2286_p8 = scmp.lt.u32.totalorder %s2282_s25, %s2653_s6 }
 0xf0d   :  { %p2288_p9 = pnand %p2286_p8, %p2283_p7 }
 0xf0f   :  { %2291 = shalt.err (!%p2288_p9)
}
 0xf10   :  { %1891 = dma.vmem_to_hbm [thread:$0]  %s1886_s22, 256, %s2653_s6, [#allocation5], %s2299_s7, %s2299_s7, %s2300_s8  }
 0xf11   :  { %2296 = dma.done.wait [#allocation5], 256  }
 0xf12   :  { %2297 = vsyncadd [#allocation5], 4294967040 }
 0xf13   :  { %1895 = vsyncpa [#allocation4], 1 }
 0xf14   :  { %1896 = vsyncpa [#allocation7], 1 }
 0xf15   :  { %1897 = vsyncpa [#allocation5], 1 }

</bundles_post_ra>
